<compile_context>
chip_gen: v6e
topology: v6e:2x2x1
jax: 0.10.0
libtpu: 0.0.40
codegen_flags: <defaults>
</compile_context>

<pallas_src>
import functools

import jax
import jax.numpy as jnp
from jax.experimental import pallas as pl
from jax.experimental.pallas import tpu as pltpu

K = 7      # conv kernel size
PAD = 3    # conv padding


def _round_up(a, b):
    return (a + b - 1) // b * b


def _edge_guide_kernel(w_ref, b_ref, x_ref, ew_ref, o_ref, att_ref, pads_ref, *, W):
    """One (batch, channel-tile) grid step.

    w_ref    : SMEM (2*K*K,) f32  flattened conv weight, [in_ch, ky, kx] order
    b_ref    : SMEM (1,)     f32  conv bias
    x_ref    : VMEM (TC, H*W)     channel tile of the input features (flat spatial)
    ew_ref   : VMEM (Ce, H*W)     edge weights for this sample (flat spatial)
    o_ref    : VMEM (TC, H*W)     output tile = x * sigmoid(relu(conv(cat(mean,max))))
    att_ref  : VMEM (1, H*W) f32  scratch: attention map, persists across C tiles
    pads_ref : VMEM (2, HWP) f32  scratch: zero-padded flat (mean, max) maps
    """
    HW = x_ref.shape[-1]
    H = HW // W
    Ce = ew_ref.shape[0]
    OFF = PAD * W + PAD            # flat offset of pixel (0, 0) inside pads_ref

    c_blk = pl.program_id(1)

    @pl.when(c_blk == 0)
    def _compute_attention():
        ew = ew_ref[...].astype(jnp.float32)                     # (Ce, HW)
        avg = jnp.sum(ew, axis=0, keepdims=True) * (1.0 / Ce)    # (1, HW) channel mean
        mx = jnp.max(ew, axis=0, keepdims=True)                  # (1, HW) channel max

        # Zero-filled, 128-aligned flat scratch; interior = the two maps.
        pads_ref[...] = jnp.zeros_like(pads_ref)
        pads_ref[0:1, OFF:OFF + HW] = avg
        pads_ref[1:2, OFF:OFF + HW] = mx
        pads = pads_ref[...]                                     # (2, HWP)

        # Column index of each flat pixel, for left/right zero-pad masking.
        col = jax.lax.broadcasted_iota(jnp.int32, (1, HW), 1) % W

        # 7x7 conv over 2 input channels as 49 shifted flat reads.
        # Taps that fall above/below the image read the zero-filled scratch
        # ends; taps that fall left/right of the image wrap to a neighboring
        # row and are zeroed by the per-column mask.  One accumulator per kx
        # column -> 7 independent MAC chains (ILP), tree-summed at the end.
        parts = []
        for kx in range(K):
            dx = kx - PAD
            part = jnp.zeros((1, HW), jnp.float32)
            for ky in range(K):
                start = OFF + (ky - PAD) * W + dx
                part = part + (
                    pads[0:1, start:start + HW] * w_ref[ky * K + kx]
                    + pads[1:2, start:start + HW] * w_ref[K * K + ky * K + kx])
            if dx != 0:
                mask = jnp.logical_and(col >= -dx, col < W - dx).astype(jnp.float32)
                part = mask * part
            parts.append(part)

        conv = ((parts[0] + parts[1]) + (parts[2] + parts[3])
                + ((parts[4] + parts[5]) + parts[6]) + b_ref[0])
        att_ref[...] = jax.nn.sigmoid(jnp.maximum(conv, 0.0))    # sigmoid(relu(.))

    # Gating, every channel tile: lane-dense (TC, HW) * (1, HW) broadcast.
    o_ref[...] = (x_ref[...].astype(jnp.float32) * att_ref[...]).astype(o_ref.dtype)


def edge_guide_attention(x, edgeweight, conv_w, conv_b, *, block_c=None):
    """x: (N,C,H,W), edgeweight: (N,Ce,H,W), conv_w: (1,2,K,K), conv_b: (1,)."""
    N, C, H, W = x.shape
    _, Ce, He, We = edgeweight.shape
    assert (He, We) == (H, W)
    HW = H * W
    OFF = PAD * W + PAD
    HWP = _round_up(HW + 2 * OFF, 128)

    # Lane-dense flat spatial layout (free reshapes for contiguous NCHW).
    x_flat = x.reshape(N, C, HW)
    ew_flat = edgeweight.reshape(N, Ce, HW)
    w_flat = conv_w.reshape(-1).astype(jnp.float32)   # (2*K*K,)
    b_flat = conv_b.reshape(-1).astype(jnp.float32)   # (1,)

    # Channel tile: bound VMEM per grid step (~2 MiB of x per pipeline buffer).
    if block_c is None:
        cap = max(1, (2 * 1024 * 1024 // 4) // HW)
        block_c = C if cap >= C else max(8, (cap // 8) * 8)
    block_c = min(block_c, C)
    num_c_blocks = -(-C // block_c)

    kernel = functools.partial(_edge_guide_kernel, W=W)

    out_flat = pl.pallas_call(
        kernel,
        out_shape=jax.ShapeDtypeStruct((N, C, HW), x.dtype),
        grid=(N, num_c_blocks),
        in_specs=[
            pl.BlockSpec(memory_space=pltpu.MemorySpace.SMEM),           # conv weight
            pl.BlockSpec(memory_space=pltpu.MemorySpace.SMEM),           # conv bias
            pl.BlockSpec((None, block_c, HW), lambda n, c: (n, c, 0)),   # x
            pl.BlockSpec((None, Ce, HW), lambda n, c: (n, 0, 0)),        # edgeweight
        ],
        out_specs=pl.BlockSpec((None, block_c, HW), lambda n, c: (n, c, 0)),
        scratch_shapes=[
            pltpu.VMEM((1, HW), jnp.float32),    # attention map (persists over C tiles)
            pltpu.VMEM((2, HWP), jnp.float32),   # zero-padded flat mean/max maps
        ],
        compiler_params=pltpu.CompilerParams(
            dimension_semantics=("parallel", "arbitrary")),
    )(w_flat, b_flat, x_flat, ew_flat)

    return out_flat.reshape(N, C, H, W)


def reference(x, edgeweight, conv_w, conv_b):
    """Pure-JAX reference matching the PyTorch forward."""
    avg = jnp.mean(edgeweight, axis=1, keepdims=True)
    mx = jnp.max(edgeweight, axis=1, keepdims=True)
    cat = jnp.concatenate([avg, mx], axis=1)
    conv = jax.lax.conv_general_dilated(
        cat, conv_w, window_strides=(1, 1), padding=[(PAD, PAD), (PAD, PAD)],
        dimension_numbers=("NCHW", "OIHW", "NCHW")) + conv_b.reshape(1, 1, 1, 1)
    att = jax.nn.sigmoid(jax.nn.relu(conv))
    return x * att


if __name__ == "__main__":
    key = jax.random.PRNGKey(0)
    kx_, ke, kw, kb = jax.random.split(key, 4)

    N, C, H, W = 2, 4, 16, 16
    Ce = 4

    x = jax.random.normal(kx_, (N, C, H, W), dtype=jnp.float32)
    edgeweight = jax.random.normal(ke, (N, Ce, H, W), dtype=jnp.float32)

    # Deterministic conv parameter init (PyTorch-style kaiming-uniform bounds).
    fan_in = 2 * K * K
    bound = 1.0 / (fan_in ** 0.5)
    conv_w = jax.random.uniform(kw, (1, 2, K, K), jnp.float32, -bound, bound)
    conv_b = jax.random.uniform(kb, (1,), jnp.float32, -bound, bound)

    out = edge_guide_attention(x, edgeweight, conv_w, conv_b)
    out = jax.block_until_ready(out)

    ref = reference(x, edgeweight, conv_w, conv_b)
    assert out.shape == (N, C, H, W)
    assert jnp.allclose(out, ref, atol=1e-5, rtol=1e-5), "mismatch vs reference"

    print("KERNEL_OK")
</pallas_src>

<mosaic_0001>
module attributes {stable_mosaic.version = 11 : i64} {
  func.func @_edge_guide_kernel(%arg0: i32, %arg1: i32, %arg2: memref<98xf32, #tpu.memory_space<smem>>, %arg3: memref<1xf32, #tpu.memory_space<smem>>, %arg4: memref<1x4x256xf32, #tpu.memory_space<vmem>>, %arg5: memref<1x4x256xf32, #tpu.memory_space<vmem>>, %arg6: memref<1x4x256xf32, #tpu.memory_space<vmem>>, %arg7: memref<1x256xf32, #tpu.memory_space<vmem>>, %arg8: memref<2x384xf32, #tpu.memory_space<vmem>>) attributes {dimension_semantics = [#tpu.dimension_semantics<parallel>, #tpu.dimension_semantics<arbitrary>], iteration_bounds = array<i64: 2, 1>, scalar_prefetch = 0 : i64, scratch_operands = 2 : i64, tpu.core_type = #tpu.core_type<tc>, window_params = [{transform_indices = @transform_0, window_bounds = array<i64: 98>}, {transform_indices = @transform_1, window_bounds = array<i64: 1>}, {transform_indices = @transform_2, window_bounds = array<i64: 1, 4, 256>}, {transform_indices = @transform_3, window_bounds = array<i64: 1, 4, 256>}, {transform_indices = @transform_4, window_bounds = array<i64: 1, 4, 256>}]} {
    %c0_i32 = arith.constant 0 : i32
    %0 = arith.cmpi eq, %arg1, %c0_i32 : i32
    %1 = arith.extui %0 : i1 to i32
    %c0_i32_0 = arith.constant 0 : i32
    %2 = arith.cmpi ne, %1, %c0_i32_0 : i32
    scf.if %2 {
      %c0_8 = arith.constant 0 : index
      %c0_9 = arith.constant 0 : index
      %c0_10 = arith.constant 0 : index
      %11 = vector.load %arg5[%c0_8, %c0_9, %c0_10] : memref<1x4x256xf32, #tpu.memory_space<vmem>>, vector<1x4x256xf32>
      %12 = vector.shape_cast %11 : vector<1x4x256xf32> to vector<4x256xf32>
      %cst = arith.constant dense<0.000000e+00> : vector<256xf32>
      %13 = vector.multi_reduction <add>, %12, %cst [0] : vector<4x256xf32> to vector<256xf32>
      %14 = vector.shape_cast %13 : vector<256xf32> to vector<1x256xf32>
      %cst_11 = arith.constant 2.500000e-01 : f32
      %15 = vector.broadcast %cst_11 : f32 to vector<1x256xf32>
      %16 = arith.mulf %14, %15 : vector<1x256xf32>
      %cst_12 = arith.constant dense<0xFF800000> : vector<256xf32>
      %17 = vector.multi_reduction <maximumf>, %12, %cst_12 [0] : vector<4x256xf32> to vector<256xf32>
      %18 = vector.shape_cast %17 : vector<256xf32> to vector<1x256xf32>
      %cst_13 = arith.constant 0.000000e+00 : f32
      %19 = vector.broadcast %cst_13 : f32 to vector<2x384xf32>
      %c0_14 = arith.constant 0 : index
      %c0_15 = arith.constant 0 : index
      %20 = vector.load %arg8[%c0_14, %c0_15] : memref<2x384xf32, #tpu.memory_space<vmem>>, vector<2x384xf32>
      tpu.vector_store %arg8[%c0_14, %c0_15], %19 {strides = array<i32>} : memref<2x384xf32, #tpu.memory_space<vmem>>, vector<2x384xf32>,
      %c0_16 = arith.constant 0 : index
      %c51 = arith.constant 51 : index
      %21 = vector.load %arg8[%c0_16, %c51] : memref<2x384xf32, #tpu.memory_space<vmem>>, vector<1x256xf32>
      tpu.vector_store %arg8[%c0_16, %c51], %16 {strides = array<i32>} : memref<2x384xf32, #tpu.memory_space<vmem>>, vector<1x256xf32>,
      %c1 = arith.constant 1 : index
      %c51_17 = arith.constant 51 : index
      %22 = vector.load %arg8[%c1, %c51_17] : memref<2x384xf32, #tpu.memory_space<vmem>>, vector<1x256xf32>
      tpu.vector_store %arg8[%c1, %c51_17], %18 {strides = array<i32>} : memref<2x384xf32, #tpu.memory_space<vmem>>, vector<1x256xf32>,
      %c0_18 = arith.constant 0 : index
      %c0_19 = arith.constant 0 : index
      %23 = vector.load %arg8[%c0_18, %c0_19] : memref<2x384xf32, #tpu.memory_space<vmem>>, vector<2x384xf32>
      %24 = tpu.iota {dimensions = array<i32: 1>} : vector<1x256xi32>
      %c16_i32 = arith.constant 16 : i32
      %c0_i32_20 = arith.constant 0 : i32
      %25 = arith.cmpi eq, %c16_i32, %c0_i32_20 : i32
      %c1_i32 = arith.constant 1 : i32
      %26 = arith.select %25, %c1_i32, %c16_i32 : i32
      %27 = vector.broadcast %26 : i32 to vector<1x256xi32>
      %28 = arith.remsi %24, %27 : vector<1x256xi32>
      %c0_i32_21 = arith.constant 0 : i32
      %29 = vector.broadcast %c0_i32_21 : i32 to vector<1x256xi32>
      %30 = arith.cmpi ne, %28, %29 : vector<1x256xi32>
      %c0_i32_22 = arith.constant 0 : i32
      %31 = vector.broadcast %c0_i32_22 : i32 to vector<1x256xi32>
      %32 = arith.cmpi slt, %28, %31 : vector<1x256xi32>
      %c0_i32_23 = arith.constant 0 : i32
      %33 = arith.cmpi slt, %26, %c0_i32_23 : i32
      %34 = vector.broadcast %33 : i1 to vector<1x256xi1>
      %35 = vector.broadcast %34 : vector<1x256xi1> to vector<1x256xi1>
      %36 = arith.xori %32, %35 : vector<1x256xi1>
      %37 = arith.andi %36, %30 : vector<1x256xi1>
      %38 = vector.broadcast %26 : i32 to vector<1x256xi32>
      %39 = arith.addi %28, %38 : vector<1x256xi32>
      %40 = arith.select %37, %39, %28 : vector<1x256xi1>, vector<1x256xi32>
      %cst_24 = arith.constant 0.000000e+00 : f32
      %41 = vector.broadcast %cst_24 : f32 to vector<1x256xf32>
      %42 = vector.extract_strided_slice %23 {offsets = [0, 0], sizes = [1, 256], strides = [1, 1]} : vector<2x384xf32> to vector<1x256xf32>
      %c0_25 = arith.constant 0 : index
      %43 = memref.load %arg2[%c0_25] : memref<98xf32, #tpu.memory_space<smem>>
      %44 = vector.broadcast %43 : f32 to vector<1x256xf32>
      %45 = arith.mulf %42, %44 : vector<1x256xf32>
      %46 = vector.extract_strided_slice %23 {offsets = [1, 0], sizes = [1, 256], strides = [1, 1]} : vector<2x384xf32> to vector<1x256xf32>
      %c49 = arith.constant 49 : index
      %47 = memref.load %arg2[%c49] : memref<98xf32, #tpu.memory_space<smem>>
      %48 = vector.broadcast %47 : f32 to vector<1x256xf32>
      %49 = arith.mulf %46, %48 : vector<1x256xf32>
      %50 = arith.addf %45, %49 : vector<1x256xf32>
      %51 = arith.addf %41, %50 : vector<1x256xf32>
      %52 = vector.extract_strided_slice %23 {offsets = [0, 16], sizes = [1, 256], strides = [1, 1]} : vector<2x384xf32> to vector<1x256xf32>
      %c7 = arith.constant 7 : index
      %53 = memref.load %arg2[%c7] : memref<98xf32, #tpu.memory_space<smem>>
      %54 = vector.broadcast %53 : f32 to vector<1x256xf32>
      %55 = arith.mulf %52, %54 : vector<1x256xf32>
      %56 = vector.extract_strided_slice %23 {offsets = [1, 16], sizes = [1, 256], strides = [1, 1]} : vector<2x384xf32> to vector<1x256xf32>
      %c56 = arith.constant 56 : index
      %57 = memref.load %arg2[%c56] : memref<98xf32, #tpu.memory_space<smem>>
      %58 = vector.broadcast %57 : f32 to vector<1x256xf32>
      %59 = arith.mulf %56, %58 : vector<1x256xf32>
      %60 = arith.addf %55, %59 : vector<1x256xf32>
      %61 = arith.addf %51, %60 : vector<1x256xf32>
      %62 = vector.extract_strided_slice %23 {offsets = [0, 32], sizes = [1, 256], strides = [1, 1]} : vector<2x384xf32> to vector<1x256xf32>
      %c14 = arith.constant 14 : index
      %63 = memref.load %arg2[%c14] : memref<98xf32, #tpu.memory_space<smem>>
      %64 = vector.broadcast %63 : f32 to vector<1x256xf32>
      %65 = arith.mulf %62, %64 : vector<1x256xf32>
      %66 = vector.extract_strided_slice %23 {offsets = [1, 32], sizes = [1, 256], strides = [1, 1]} : vector<2x384xf32> to vector<1x256xf32>
      %c63 = arith.constant 63 : index
      %67 = memref.load %arg2[%c63] : memref<98xf32, #tpu.memory_space<smem>>
      %68 = vector.broadcast %67 : f32 to vector<1x256xf32>
      %69 = arith.mulf %66, %68 : vector<1x256xf32>
      %70 = arith.addf %65, %69 : vector<1x256xf32>
      %71 = arith.addf %61, %70 : vector<1x256xf32>
      %72 = vector.extract_strided_slice %23 {offsets = [0, 48], sizes = [1, 256], strides = [1, 1]} : vector<2x384xf32> to vector<1x256xf32>
      %c21 = arith.constant 21 : index
      %73 = memref.load %arg2[%c21] : memref<98xf32, #tpu.memory_space<smem>>
      %74 = vector.broadcast %73 : f32 to vector<1x256xf32>
      %75 = arith.mulf %72, %74 : vector<1x256xf32>
      %76 = vector.extract_strided_slice %23 {offsets = [1, 48], sizes = [1, 256], strides = [1, 1]} : vector<2x384xf32> to vector<1x256xf32>
      %c70 = arith.constant 70 : index
      %77 = memref.load %arg2[%c70] : memref<98xf32, #tpu.memory_space<smem>>
      %78 = vector.broadcast %77 : f32 to vector<1x256xf32>
      %79 = arith.mulf %76, %78 : vector<1x256xf32>
      %80 = arith.addf %75, %79 : vector<1x256xf32>
      %81 = arith.addf %71, %80 : vector<1x256xf32>
      %82 = vector.extract_strided_slice %23 {offsets = [0, 64], sizes = [1, 256], strides = [1, 1]} : vector<2x384xf32> to vector<1x256xf32>
      %c28 = arith.constant 28 : index
      %83 = memref.load %arg2[%c28] : memref<98xf32, #tpu.memory_space<smem>>
      %84 = vector.broadcast %83 : f32 to vector<1x256xf32>
      %85 = arith.mulf %82, %84 : vector<1x256xf32>
      %86 = vector.extract_strided_slice %23 {offsets = [1, 64], sizes = [1, 256], strides = [1, 1]} : vector<2x384xf32> to vector<1x256xf32>
      %c77 = arith.constant 77 : index
      %87 = memref.load %arg2[%c77] : memref<98xf32, #tpu.memory_space<smem>>
      %88 = vector.broadcast %87 : f32 to vector<1x256xf32>
      %89 = arith.mulf %86, %88 : vector<1x256xf32>
      %90 = arith.addf %85, %89 : vector<1x256xf32>
      %91 = arith.addf %81, %90 : vector<1x256xf32>
      %92 = vector.extract_strided_slice %23 {offsets = [0, 80], sizes = [1, 256], strides = [1, 1]} : vector<2x384xf32> to vector<1x256xf32>
      %c35 = arith.constant 35 : index
      %93 = memref.load %arg2[%c35] : memref<98xf32, #tpu.memory_space<smem>>
      %94 = vector.broadcast %93 : f32 to vector<1x256xf32>
      %95 = arith.mulf %92, %94 : vector<1x256xf32>
      %96 = vector.extract_strided_slice %23 {offsets = [1, 80], sizes = [1, 256], strides = [1, 1]} : vector<2x384xf32> to vector<1x256xf32>
      %c84 = arith.constant 84 : index
      %97 = memref.load %arg2[%c84] : memref<98xf32, #tpu.memory_space<smem>>
      %98 = vector.broadcast %97 : f32 to vector<1x256xf32>
      %99 = arith.mulf %96, %98 : vector<1x256xf32>
      %100 = arith.addf %95, %99 : vector<1x256xf32>
      %101 = arith.addf %91, %100 : vector<1x256xf32>
      %102 = vector.extract_strided_slice %23 {offsets = [0, 96], sizes = [1, 256], strides = [1, 1]} : vector<2x384xf32> to vector<1x256xf32>
      %c42 = arith.constant 42 : index
      %103 = memref.load %arg2[%c42] : memref<98xf32, #tpu.memory_space<smem>>
      %104 = vector.broadcast %103 : f32 to vector<1x256xf32>
      %105 = arith.mulf %102, %104 : vector<1x256xf32>
      %106 = vector.extract_strided_slice %23 {offsets = [1, 96], sizes = [1, 256], strides = [1, 1]} : vector<2x384xf32> to vector<1x256xf32>
      %c91 = arith.constant 91 : index
      %107 = memref.load %arg2[%c91] : memref<98xf32, #tpu.memory_space<smem>>
      %108 = vector.broadcast %107 : f32 to vector<1x256xf32>
      %109 = arith.mulf %106, %108 : vector<1x256xf32>
      %110 = arith.addf %105, %109 : vector<1x256xf32>
      %111 = arith.addf %101, %110 : vector<1x256xf32>
      %c3_i32 = arith.constant 3 : i32
      %112 = vector.broadcast %c3_i32 : i32 to vector<1x256xi32>
      %113 = arith.cmpi sge, %40, %112 : vector<1x256xi32>
      %c19_i32 = arith.constant 19 : i32
      %114 = vector.broadcast %c19_i32 : i32 to vector<1x256xi32>
      %115 = arith.cmpi slt, %40, %114 : vector<1x256xi32>
      %116 = arith.andi %113, %115 : vector<1x256xi1>
      %117 = arith.extui %116 : vector<1x256xi1> to vector<1x256xi32>
      %118 = arith.sitofp %117 : vector<1x256xi32> to vector<1x256xf32>
      %119 = arith.mulf %118, %111 : vector<1x256xf32>
      %cst_26 = arith.constant 0.000000e+00 : f32
      %120 = vector.broadcast %cst_26 : f32 to vector<1x256xf32>
      %121 = vector.extract_strided_slice %23 {offsets = [0, 1], sizes = [1, 256], strides = [1, 1]} : vector<2x384xf32> to vector<1x256xf32>
      %c1_27 = arith.constant 1 : index
      %122 = memref.load %arg2[%c1_27] : memref<98xf32, #tpu.memory_space<smem>>
      %123 = vector.broadcast %122 : f32 to vector<1x256xf32>
      %124 = arith.mulf %121, %123 : vector<1x256xf32>
      %125 = vector.extract_strided_slice %23 {offsets = [1, 1], sizes = [1, 256], strides = [1, 1]} : vector<2x384xf32> to vector<1x256xf32>
      %c50 = arith.constant 50 : index
      %126 = memref.load %arg2[%c50] : memref<98xf32, #tpu.memory_space<smem>>
      %127 = vector.broadcast %126 : f32 to vector<1x256xf32>
      %128 = arith.mulf %125, %127 : vector<1x256xf32>
      %129 = arith.addf %124, %128 : vector<1x256xf32>
      %130 = arith.addf %120, %129 : vector<1x256xf32>
      %131 = vector.extract_strided_slice %23 {offsets = [0, 17], sizes = [1, 256], strides = [1, 1]} : vector<2x384xf32> to vector<1x256xf32>
      %c8 = arith.constant 8 : index
      %132 = memref.load %arg2[%c8] : memref<98xf32, #tpu.memory_space<smem>>
      %133 = vector.broadcast %132 : f32 to vector<1x256xf32>
      %134 = arith.mulf %131, %133 : vector<1x256xf32>
      %135 = vector.extract_strided_slice %23 {offsets = [1, 17], sizes = [1, 256], strides = [1, 1]} : vector<2x384xf32> to vector<1x256xf32>
      %c57 = arith.constant 57 : index
      %136 = memref.load %arg2[%c57] : memref<98xf32, #tpu.memory_space<smem>>
      %137 = vector.broadcast %136 : f32 to vector<1x256xf32>
      %138 = arith.mulf %135, %137 : vector<1x256xf32>
      %139 = arith.addf %134, %138 : vector<1x256xf32>
      %140 = arith.addf %130, %139 : vector<1x256xf32>
      %141 = vector.extract_strided_slice %23 {offsets = [0, 33], sizes = [1, 256], strides = [1, 1]} : vector<2x384xf32> to vector<1x256xf32>
      %c15 = arith.constant 15 : index
      %142 = memref.load %arg2[%c15] : memref<98xf32, #tpu.memory_space<smem>>
      %143 = vector.broadcast %142 : f32 to vector<1x256xf32>
      %144 = arith.mulf %141, %143 : vector<1x256xf32>
      %145 = vector.extract_strided_slice %23 {offsets = [1, 33], sizes = [1, 256], strides = [1, 1]} : vector<2x384xf32> to vector<1x256xf32>
      %c64 = arith.constant 64 : index
      %146 = memref.load %arg2[%c64] : memref<98xf32, #tpu.memory_space<smem>>
      %147 = vector.broadcast %146 : f32 to vector<1x256xf32>
      %148 = arith.mulf %145, %147 : vector<1x256xf32>
      %149 = arith.addf %144, %148 : vector<1x256xf32>
      %150 = arith.addf %140, %149 : vector<1x256xf32>
      %151 = vector.extract_strided_slice %23 {offsets = [0, 49], sizes = [1, 256], strides = [1, 1]} : vector<2x384xf32> to vector<1x256xf32>
      %c22 = arith.constant 22 : index
      %152 = memref.load %arg2[%c22] : memref<98xf32, #tpu.memory_space<smem>>
      %153 = vector.broadcast %152 : f32 to vector<1x256xf32>
      %154 = arith.mulf %151, %153 : vector<1x256xf32>
      %155 = vector.extract_strided_slice %23 {offsets = [1, 49], sizes = [1, 256], strides = [1, 1]} : vector<2x384xf32> to vector<1x256xf32>
      %c71 = arith.constant 71 : index
      %156 = memref.load %arg2[%c71] : memref<98xf32, #tpu.memory_space<smem>>
      %157 = vector.broadcast %156 : f32 to vector<1x256xf32>
      %158 = arith.mulf %155, %157 : vector<1x256xf32>
      %159 = arith.addf %154, %158 : vector<1x256xf32>
      %160 = arith.addf %150, %159 : vector<1x256xf32>
      %161 = vector.extract_strided_slice %23 {offsets = [0, 65], sizes = [1, 256], strides = [1, 1]} : vector<2x384xf32> to vector<1x256xf32>
      %c29 = arith.constant 29 : index
      %162 = memref.load %arg2[%c29] : memref<98xf32, #tpu.memory_space<smem>>
      %163 = vector.broadcast %162 : f32 to vector<1x256xf32>
      %164 = arith.mulf %161, %163 : vector<1x256xf32>
      %165 = vector.extract_strided_slice %23 {offsets = [1, 65], sizes = [1, 256], strides = [1, 1]} : vector<2x384xf32> to vector<1x256xf32>
      %c78 = arith.constant 78 : index
      %166 = memref.load %arg2[%c78] : memref<98xf32, #tpu.memory_space<smem>>
      %167 = vector.broadcast %166 : f32 to vector<1x256xf32>
      %168 = arith.mulf %165, %167 : vector<1x256xf32>
      %169 = arith.addf %164, %168 : vector<1x256xf32>
      %170 = arith.addf %160, %169 : vector<1x256xf32>
      %171 = vector.extract_strided_slice %23 {offsets = [0, 81], sizes = [1, 256], strides = [1, 1]} : vector<2x384xf32> to vector<1x256xf32>
      %c36 = arith.constant 36 : index
      %172 = memref.load %arg2[%c36] : memref<98xf32, #tpu.memory_space<smem>>
      %173 = vector.broadcast %172 : f32 to vector<1x256xf32>
      %174 = arith.mulf %171, %173 : vector<1x256xf32>
      %175 = vector.extract_strided_slice %23 {offsets = [1, 81], sizes = [1, 256], strides = [1, 1]} : vector<2x384xf32> to vector<1x256xf32>
      %c85 = arith.constant 85 : index
      %176 = memref.load %arg2[%c85] : memref<98xf32, #tpu.memory_space<smem>>
      %177 = vector.broadcast %176 : f32 to vector<1x256xf32>
      %178 = arith.mulf %175, %177 : vector<1x256xf32>
      %179 = arith.addf %174, %178 : vector<1x256xf32>
      %180 = arith.addf %170, %179 : vector<1x256xf32>
      %181 = vector.extract_strided_slice %23 {offsets = [0, 97], sizes = [1, 256], strides = [1, 1]} : vector<2x384xf32> to vector<1x256xf32>
      %c43 = arith.constant 43 : index
      %182 = memref.load %arg2[%c43] : memref<98xf32, #tpu.memory_space<smem>>
      %183 = vector.broadcast %182 : f32 to vector<1x256xf32>
      %184 = arith.mulf %181, %183 : vector<1x256xf32>
      %185 = vector.extract_strided_slice %23 {offsets = [1, 97], sizes = [1, 256], strides = [1, 1]} : vector<2x384xf32> to vector<1x256xf32>
      %c92 = arith.constant 92 : index
      %186 = memref.load %arg2[%c92] : memref<98xf32, #tpu.memory_space<smem>>
      %187 = vector.broadcast %186 : f32 to vector<1x256xf32>
      %188 = arith.mulf %185, %187 : vector<1x256xf32>
      %189 = arith.addf %184, %188 : vector<1x256xf32>
      %190 = arith.addf %180, %189 : vector<1x256xf32>
      %c2_i32 = arith.constant 2 : i32
      %191 = vector.broadcast %c2_i32 : i32 to vector<1x256xi32>
      %192 = arith.cmpi sge, %40, %191 : vector<1x256xi32>
      %c18_i32 = arith.constant 18 : i32
      %193 = vector.broadcast %c18_i32 : i32 to vector<1x256xi32>
      %194 = arith.cmpi slt, %40, %193 : vector<1x256xi32>
      %195 = arith.andi %192, %194 : vector<1x256xi1>
      %196 = arith.extui %195 : vector<1x256xi1> to vector<1x256xi32>
      %197 = arith.sitofp %196 : vector<1x256xi32> to vector<1x256xf32>
      %198 = arith.mulf %197, %190 : vector<1x256xf32>
      %cst_28 = arith.constant 0.000000e+00 : f32
      %199 = vector.broadcast %cst_28 : f32 to vector<1x256xf32>
      %200 = vector.extract_strided_slice %23 {offsets = [0, 2], sizes = [1, 256], strides = [1, 1]} : vector<2x384xf32> to vector<1x256xf32>
      %c2 = arith.constant 2 : index
      %201 = memref.load %arg2[%c2] : memref<98xf32, #tpu.memory_space<smem>>
      %202 = vector.broadcast %201 : f32 to vector<1x256xf32>
      %203 = arith.mulf %200, %202 : vector<1x256xf32>
      %204 = vector.extract_strided_slice %23 {offsets = [1, 2], sizes = [1, 256], strides = [1, 1]} : vector<2x384xf32> to vector<1x256xf32>
      %c51_29 = arith.constant 51 : index
      %205 = memref.load %arg2[%c51_29] : memref<98xf32, #tpu.memory_space<smem>>
      %206 = vector.broadcast %205 : f32 to vector<1x256xf32>
      %207 = arith.mulf %204, %206 : vector<1x256xf32>
      %208 = arith.addf %203, %207 : vector<1x256xf32>
      %209 = arith.addf %199, %208 : vector<1x256xf32>
      %210 = vector.extract_strided_slice %23 {offsets = [0, 18], sizes = [1, 256], strides = [1, 1]} : vector<2x384xf32> to vector<1x256xf32>
      %c9 = arith.constant 9 : index
      %211 = memref.load %arg2[%c9] : memref<98xf32, #tpu.memory_space<smem>>
      %212 = vector.broadcast %211 : f32 to vector<1x256xf32>
      %213 = arith.mulf %210, %212 : vector<1x256xf32>
      %214 = vector.extract_strided_slice %23 {offsets = [1, 18], sizes = [1, 256], strides = [1, 1]} : vector<2x384xf32> to vector<1x256xf32>
      %c58 = arith.constant 58 : index
      %215 = memref.load %arg2[%c58] : memref<98xf32, #tpu.memory_space<smem>>
      %216 = vector.broadcast %215 : f32 to vector<1x256xf32>
      %217 = arith.mulf %214, %216 : vector<1x256xf32>
      %218 = arith.addf %213, %217 : vector<1x256xf32>
      %219 = arith.addf %209, %218 : vector<1x256xf32>
      %220 = vector.extract_strided_slice %23 {offsets = [0, 34], sizes = [1, 256], strides = [1, 1]} : vector<2x384xf32> to vector<1x256xf32>
      %c16 = arith.constant 16 : index
      %221 = memref.load %arg2[%c16] : memref<98xf32, #tpu.memory_space<smem>>
      %222 = vector.broadcast %221 : f32 to vector<1x256xf32>
      %223 = arith.mulf %220, %222 : vector<1x256xf32>
      %224 = vector.extract_strided_slice %23 {offsets = [1, 34], sizes = [1, 256], strides = [1, 1]} : vector<2x384xf32> to vector<1x256xf32>
      %c65 = arith.constant 65 : index
      %225 = memref.load %arg2[%c65] : memref<98xf32, #tpu.memory_space<smem>>
      %226 = vector.broadcast %225 : f32 to vector<1x256xf32>
      %227 = arith.mulf %224, %226 : vector<1x256xf32>
      %228 = arith.addf %223, %227 : vector<1x256xf32>
      %229 = arith.addf %219, %228 : vector<1x256xf32>
      %230 = vector.extract_strided_slice %23 {offsets = [0, 50], sizes = [1, 256], strides = [1, 1]} : vector<2x384xf32> to vector<1x256xf32>
      %c23 = arith.constant 23 : index
      %231 = memref.load %arg2[%c23] : memref<98xf32, #tpu.memory_space<smem>>
      %232 = vector.broadcast %231 : f32 to vector<1x256xf32>
      %233 = arith.mulf %230, %232 : vector<1x256xf32>
      %234 = vector.extract_strided_slice %23 {offsets = [1, 50], sizes = [1, 256], strides = [1, 1]} : vector<2x384xf32> to vector<1x256xf32>
      %c72 = arith.constant 72 : index
      %235 = memref.load %arg2[%c72] : memref<98xf32, #tpu.memory_space<smem>>
      %236 = vector.broadcast %235 : f32 to vector<1x256xf32>
      %237 = arith.mulf %234, %236 : vector<1x256xf32>
      %238 = arith.addf %233, %237 : vector<1x256xf32>
      %239 = arith.addf %229, %238 : vector<1x256xf32>
      %240 = vector.extract_strided_slice %23 {offsets = [0, 66], sizes = [1, 256], strides = [1, 1]} : vector<2x384xf32> to vector<1x256xf32>
      %c30 = arith.constant 30 : index
      %241 = memref.load %arg2[%c30] : memref<98xf32, #tpu.memory_space<smem>>
      %242 = vector.broadcast %241 : f32 to vector<1x256xf32>
      %243 = arith.mulf %240, %242 : vector<1x256xf32>
      %244 = vector.extract_strided_slice %23 {offsets = [1, 66], sizes = [1, 256], strides = [1, 1]} : vector<2x384xf32> to vector<1x256xf32>
      %c79 = arith.constant 79 : index
      %245 = memref.load %arg2[%c79] : memref<98xf32, #tpu.memory_space<smem>>
      %246 = vector.broadcast %245 : f32 to vector<1x256xf32>
      %247 = arith.mulf %244, %246 : vector<1x256xf32>
      %248 = arith.addf %243, %247 : vector<1x256xf32>
      %249 = arith.addf %239, %248 : vector<1x256xf32>
      %250 = vector.extract_strided_slice %23 {offsets = [0, 82], sizes = [1, 256], strides = [1, 1]} : vector<2x384xf32> to vector<1x256xf32>
      %c37 = arith.constant 37 : index
      %251 = memref.load %arg2[%c37] : memref<98xf32, #tpu.memory_space<smem>>
      %252 = vector.broadcast %251 : f32 to vector<1x256xf32>
      %253 = arith.mulf %250, %252 : vector<1x256xf32>
      %254 = vector.extract_strided_slice %23 {offsets = [1, 82], sizes = [1, 256], strides = [1, 1]} : vector<2x384xf32> to vector<1x256xf32>
      %c86 = arith.constant 86 : index
      %255 = memref.load %arg2[%c86] : memref<98xf32, #tpu.memory_space<smem>>
      %256 = vector.broadcast %255 : f32 to vector<1x256xf32>
      %257 = arith.mulf %254, %256 : vector<1x256xf32>
      %258 = arith.addf %253, %257 : vector<1x256xf32>
      %259 = arith.addf %249, %258 : vector<1x256xf32>
      %260 = vector.extract_strided_slice %23 {offsets = [0, 98], sizes = [1, 256], strides = [1, 1]} : vector<2x384xf32> to vector<1x256xf32>
      %c44 = arith.constant 44 : index
      %261 = memref.load %arg2[%c44] : memref<98xf32, #tpu.memory_space<smem>>
      %262 = vector.broadcast %261 : f32 to vector<1x256xf32>
      %263 = arith.mulf %260, %262 : vector<1x256xf32>
      %264 = vector.extract_strided_slice %23 {offsets = [1, 98], sizes = [1, 256], strides = [1, 1]} : vector<2x384xf32> to vector<1x256xf32>
      %c93 = arith.constant 93 : index
      %265 = memref.load %arg2[%c93] : memref<98xf32, #tpu.memory_space<smem>>
      %266 = vector.broadcast %265 : f32 to vector<1x256xf32>
      %267 = arith.mulf %264, %266 : vector<1x256xf32>
      %268 = arith.addf %263, %267 : vector<1x256xf32>
      %269 = arith.addf %259, %268 : vector<1x256xf32>
      %c1_i32_30 = arith.constant 1 : i32
      %270 = vector.broadcast %c1_i32_30 : i32 to vector<1x256xi32>
      %271 = arith.cmpi sge, %40, %270 : vector<1x256xi32>
      %c17_i32 = arith.constant 17 : i32
      %272 = vector.broadcast %c17_i32 : i32 to vector<1x256xi32>
      %273 = arith.cmpi slt, %40, %272 : vector<1x256xi32>
      %274 = arith.andi %271, %273 : vector<1x256xi1>
      %275 = arith.extui %274 : vector<1x256xi1> to vector<1x256xi32>
      %276 = arith.sitofp %275 : vector<1x256xi32> to vector<1x256xf32>
      %277 = arith.mulf %276, %269 : vector<1x256xf32>
      %cst_31 = arith.constant 0.000000e+00 : f32
      %278 = vector.broadcast %cst_31 : f32 to vector<1x256xf32>
      %279 = vector.extract_strided_slice %23 {offsets = [0, 3], sizes = [1, 256], strides = [1, 1]} : vector<2x384xf32> to vector<1x256xf32>
      %c3 = arith.constant 3 : index
      %280 = memref.load %arg2[%c3] : memref<98xf32, #tpu.memory_space<smem>>
      %281 = vector.broadcast %280 : f32 to vector<1x256xf32>
      %282 = arith.mulf %279, %281 : vector<1x256xf32>
      %283 = vector.extract_strided_slice %23 {offsets = [1, 3], sizes = [1, 256], strides = [1, 1]} : vector<2x384xf32> to vector<1x256xf32>
      %c52 = arith.constant 52 : index
      %284 = memref.load %arg2[%c52] : memref<98xf32, #tpu.memory_space<smem>>
      %285 = vector.broadcast %284 : f32 to vector<1x256xf32>
      %286 = arith.mulf %283, %285 : vector<1x256xf32>
      %287 = arith.addf %282, %286 : vector<1x256xf32>
      %288 = arith.addf %278, %287 : vector<1x256xf32>
      %289 = vector.extract_strided_slice %23 {offsets = [0, 19], sizes = [1, 256], strides = [1, 1]} : vector<2x384xf32> to vector<1x256xf32>
      %c10 = arith.constant 10 : index
      %290 = memref.load %arg2[%c10] : memref<98xf32, #tpu.memory_space<smem>>
      %291 = vector.broadcast %290 : f32 to vector<1x256xf32>
      %292 = arith.mulf %289, %291 : vector<1x256xf32>
      %293 = vector.extract_strided_slice %23 {offsets = [1, 19], sizes = [1, 256], strides = [1, 1]} : vector<2x384xf32> to vector<1x256xf32>
      %c59 = arith.constant 59 : index
      %294 = memref.load %arg2[%c59] : memref<98xf32, #tpu.memory_space<smem>>
      %295 = vector.broadcast %294 : f32 to vector<1x256xf32>
      %296 = arith.mulf %293, %295 : vector<1x256xf32>
      %297 = arith.addf %292, %296 : vector<1x256xf32>
      %298 = arith.addf %288, %297 : vector<1x256xf32>
      %299 = vector.extract_strided_slice %23 {offsets = [0, 35], sizes = [1, 256], strides = [1, 1]} : vector<2x384xf32> to vector<1x256xf32>
      %c17 = arith.constant 17 : index
      %300 = memref.load %arg2[%c17] : memref<98xf32, #tpu.memory_space<smem>>
      %301 = vector.broadcast %300 : f32 to vector<1x256xf32>
      %302 = arith.mulf %299, %301 : vector<1x256xf32>
      %303 = vector.extract_strided_slice %23 {offsets = [1, 35], sizes = [1, 256], strides = [1, 1]} : vector<2x384xf32> to vector<1x256xf32>
      %c66 = arith.constant 66 : index
      %304 = memref.load %arg2[%c66] : memref<98xf32, #tpu.memory_space<smem>>
      %305 = vector.broadcast %304 : f32 to vector<1x256xf32>
      %306 = arith.mulf %303, %305 : vector<1x256xf32>
      %307 = arith.addf %302, %306 : vector<1x256xf32>
      %308 = arith.addf %298, %307 : vector<1x256xf32>
      %309 = vector.extract_strided_slice %23 {offsets = [0, 51], sizes = [1, 256], strides = [1, 1]} : vector<2x384xf32> to vector<1x256xf32>
      %c24 = arith.constant 24 : index
      %310 = memref.load %arg2[%c24] : memref<98xf32, #tpu.memory_space<smem>>
      %311 = vector.broadcast %310 : f32 to vector<1x256xf32>
      %312 = arith.mulf %309, %311 : vector<1x256xf32>
      %313 = vector.extract_strided_slice %23 {offsets = [1, 51], sizes = [1, 256], strides = [1, 1]} : vector<2x384xf32> to vector<1x256xf32>
      %c73 = arith.constant 73 : index
      %314 = memref.load %arg2[%c73] : memref<98xf32, #tpu.memory_space<smem>>
      %315 = vector.broadcast %314 : f32 to vector<1x256xf32>
      %316 = arith.mulf %313, %315 : vector<1x256xf32>
      %317 = arith.addf %312, %316 : vector<1x256xf32>
      %318 = arith.addf %308, %317 : vector<1x256xf32>
      %319 = vector.extract_strided_slice %23 {offsets = [0, 67], sizes = [1, 256], strides = [1, 1]} : vector<2x384xf32> to vector<1x256xf32>
      %c31 = arith.constant 31 : index
      %320 = memref.load %arg2[%c31] : memref<98xf32, #tpu.memory_space<smem>>
      %321 = vector.broadcast %320 : f32 to vector<1x256xf32>
      %322 = arith.mulf %319, %321 : vector<1x256xf32>
      %323 = vector.extract_strided_slice %23 {offsets = [1, 67], sizes = [1, 256], strides = [1, 1]} : vector<2x384xf32> to vector<1x256xf32>
      %c80 = arith.constant 80 : index
      %324 = memref.load %arg2[%c80] : memref<98xf32, #tpu.memory_space<smem>>
      %325 = vector.broadcast %324 : f32 to vector<1x256xf32>
      %326 = arith.mulf %323, %325 : vector<1x256xf32>
      %327 = arith.addf %322, %326 : vector<1x256xf32>
      %328 = arith.addf %318, %327 : vector<1x256xf32>
      %329 = vector.extract_strided_slice %23 {offsets = [0, 83], sizes = [1, 256], strides = [1, 1]} : vector<2x384xf32> to vector<1x256xf32>
      %c38 = arith.constant 38 : index
      %330 = memref.load %arg2[%c38] : memref<98xf32, #tpu.memory_space<smem>>
      %331 = vector.broadcast %330 : f32 to vector<1x256xf32>
      %332 = arith.mulf %329, %331 : vector<1x256xf32>
      %333 = vector.extract_strided_slice %23 {offsets = [1, 83], sizes = [1, 256], strides = [1, 1]} : vector<2x384xf32> to vector<1x256xf32>
      %c87 = arith.constant 87 : index
      %334 = memref.load %arg2[%c87] : memref<98xf32, #tpu.memory_space<smem>>
      %335 = vector.broadcast %334 : f32 to vector<1x256xf32>
      %336 = arith.mulf %333, %335 : vector<1x256xf32>
      %337 = arith.addf %332, %336 : vector<1x256xf32>
      %338 = arith.addf %328, %337 : vector<1x256xf32>
      %339 = vector.extract_strided_slice %23 {offsets = [0, 99], sizes = [1, 256], strides = [1, 1]} : vector<2x384xf32> to vector<1x256xf32>
      %c45 = arith.constant 45 : index
      %340 = memref.load %arg2[%c45] : memref<98xf32, #tpu.memory_space<smem>>
      %341 = vector.broadcast %340 : f32 to vector<1x256xf32>
      %342 = arith.mulf %339, %341 : vector<1x256xf32>
      %343 = vector.extract_strided_slice %23 {offsets = [1, 99], sizes = [1, 256], strides = [1, 1]} : vector<2x384xf32> to vector<1x256xf32>
      %c94 = arith.constant 94 : index
      %344 = memref.load %arg2[%c94] : memref<98xf32, #tpu.memory_space<smem>>
      %345 = vector.broadcast %344 : f32 to vector<1x256xf32>
      %346 = arith.mulf %343, %345 : vector<1x256xf32>
      %347 = arith.addf %342, %346 : vector<1x256xf32>
      %348 = arith.addf %338, %347 : vector<1x256xf32>
      %cst_32 = arith.constant 0.000000e+00 : f32
      %349 = vector.broadcast %cst_32 : f32 to vector<1x256xf32>
      %350 = vector.extract_strided_slice %23 {offsets = [0, 4], sizes = [1, 256], strides = [1, 1]} : vector<2x384xf32> to vector<1x256xf32>
      %c4 = arith.constant 4 : index
      %351 = memref.load %arg2[%c4] : memref<98xf32, #tpu.memory_space<smem>>
      %352 = vector.broadcast %351 : f32 to vector<1x256xf32>
      %353 = arith.mulf %350, %352 : vector<1x256xf32>
      %354 = vector.extract_strided_slice %23 {offsets = [1, 4], sizes = [1, 256], strides = [1, 1]} : vector<2x384xf32> to vector<1x256xf32>
      %c53 = arith.constant 53 : index
      %355 = memref.load %arg2[%c53] : memref<98xf32, #tpu.memory_space<smem>>
      %356 = vector.broadcast %355 : f32 to vector<1x256xf32>
      %357 = arith.mulf %354, %356 : vector<1x256xf32>
      %358 = arith.addf %353, %357 : vector<1x256xf32>
      %359 = arith.addf %349, %358 : vector<1x256xf32>
      %360 = vector.extract_strided_slice %23 {offsets = [0, 20], sizes = [1, 256], strides = [1, 1]} : vector<2x384xf32> to vector<1x256xf32>
      %c11 = arith.constant 11 : index
      %361 = memref.load %arg2[%c11] : memref<98xf32, #tpu.memory_space<smem>>
      %362 = vector.broadcast %361 : f32 to vector<1x256xf32>
      %363 = arith.mulf %360, %362 : vector<1x256xf32>
      %364 = vector.extract_strided_slice %23 {offsets = [1, 20], sizes = [1, 256], strides = [1, 1]} : vector<2x384xf32> to vector<1x256xf32>
      %c60 = arith.constant 60 : index
      %365 = memref.load %arg2[%c60] : memref<98xf32, #tpu.memory_space<smem>>
      %366 = vector.broadcast %365 : f32 to vector<1x256xf32>
      %367 = arith.mulf %364, %366 : vector<1x256xf32>
      %368 = arith.addf %363, %367 : vector<1x256xf32>
      %369 = arith.addf %359, %368 : vector<1x256xf32>
      %370 = vector.extract_strided_slice %23 {offsets = [0, 36], sizes = [1, 256], strides = [1, 1]} : vector<2x384xf32> to vector<1x256xf32>
      %c18 = arith.constant 18 : index
      %371 = memref.load %arg2[%c18] : memref<98xf32, #tpu.memory_space<smem>>
      %372 = vector.broadcast %371 : f32 to vector<1x256xf32>
      %373 = arith.mulf %370, %372 : vector<1x256xf32>
      %374 = vector.extract_strided_slice %23 {offsets = [1, 36], sizes = [1, 256], strides = [1, 1]} : vector<2x384xf32> to vector<1x256xf32>
      %c67 = arith.constant 67 : index
      %375 = memref.load %arg2[%c67] : memref<98xf32, #tpu.memory_space<smem>>
      %376 = vector.broadcast %375 : f32 to vector<1x256xf32>
      %377 = arith.mulf %374, %376 : vector<1x256xf32>
      %378 = arith.addf %373, %377 : vector<1x256xf32>
      %379 = arith.addf %369, %378 : vector<1x256xf32>
      %380 = vector.extract_strided_slice %23 {offsets = [0, 52], sizes = [1, 256], strides = [1, 1]} : vector<2x384xf32> to vector<1x256xf32>
      %c25 = arith.constant 25 : index
      %381 = memref.load %arg2[%c25] : memref<98xf32, #tpu.memory_space<smem>>
      %382 = vector.broadcast %381 : f32 to vector<1x256xf32>
      %383 = arith.mulf %380, %382 : vector<1x256xf32>
      %384 = vector.extract_strided_slice %23 {offsets = [1, 52], sizes = [1, 256], strides = [1, 1]} : vector<2x384xf32> to vector<1x256xf32>
      %c74 = arith.constant 74 : index
      %385 = memref.load %arg2[%c74] : memref<98xf32, #tpu.memory_space<smem>>
      %386 = vector.broadcast %385 : f32 to vector<1x256xf32>
      %387 = arith.mulf %384, %386 : vector<1x256xf32>
      %388 = arith.addf %383, %387 : vector<1x256xf32>
      %389 = arith.addf %379, %388 : vector<1x256xf32>
      %390 = vector.extract_strided_slice %23 {offsets = [0, 68], sizes = [1, 256], strides = [1, 1]} : vector<2x384xf32> to vector<1x256xf32>
      %c32 = arith.constant 32 : index
      %391 = memref.load %arg2[%c32] : memref<98xf32, #tpu.memory_space<smem>>
      %392 = vector.broadcast %391 : f32 to vector<1x256xf32>
      %393 = arith.mulf %390, %392 : vector<1x256xf32>
      %394 = vector.extract_strided_slice %23 {offsets = [1, 68], sizes = [1, 256], strides = [1, 1]} : vector<2x384xf32> to vector<1x256xf32>
      %c81 = arith.constant 81 : index
      %395 = memref.load %arg2[%c81] : memref<98xf32, #tpu.memory_space<smem>>
      %396 = vector.broadcast %395 : f32 to vector<1x256xf32>
      %397 = arith.mulf %394, %396 : vector<1x256xf32>
      %398 = arith.addf %393, %397 : vector<1x256xf32>
      %399 = arith.addf %389, %398 : vector<1x256xf32>
      %400 = vector.extract_strided_slice %23 {offsets = [0, 84], sizes = [1, 256], strides = [1, 1]} : vector<2x384xf32> to vector<1x256xf32>
      %c39 = arith.constant 39 : index
      %401 = memref.load %arg2[%c39] : memref<98xf32, #tpu.memory_space<smem>>
      %402 = vector.broadcast %401 : f32 to vector<1x256xf32>
      %403 = arith.mulf %400, %402 : vector<1x256xf32>
      %404 = vector.extract_strided_slice %23 {offsets = [1, 84], sizes = [1, 256], strides = [1, 1]} : vector<2x384xf32> to vector<1x256xf32>
      %c88 = arith.constant 88 : index
      %405 = memref.load %arg2[%c88] : memref<98xf32, #tpu.memory_space<smem>>
      %406 = vector.broadcast %405 : f32 to vector<1x256xf32>
      %407 = arith.mulf %404, %406 : vector<1x256xf32>
      %408 = arith.addf %403, %407 : vector<1x256xf32>
      %409 = arith.addf %399, %408 : vector<1x256xf32>
      %410 = vector.extract_strided_slice %23 {offsets = [0, 100], sizes = [1, 256], strides = [1, 1]} : vector<2x384xf32> to vector<1x256xf32>
      %c46 = arith.constant 46 : index
      %411 = memref.load %arg2[%c46] : memref<98xf32, #tpu.memory_space<smem>>
      %412 = vector.broadcast %411 : f32 to vector<1x256xf32>
      %413 = arith.mulf %410, %412 : vector<1x256xf32>
      %414 = vector.extract_strided_slice %23 {offsets = [1, 100], sizes = [1, 256], strides = [1, 1]} : vector<2x384xf32> to vector<1x256xf32>
      %c95 = arith.constant 95 : index
      %415 = memref.load %arg2[%c95] : memref<98xf32, #tpu.memory_space<smem>>
      %416 = vector.broadcast %415 : f32 to vector<1x256xf32>
      %417 = arith.mulf %414, %416 : vector<1x256xf32>
      %418 = arith.addf %413, %417 : vector<1x256xf32>
      %419 = arith.addf %409, %418 : vector<1x256xf32>
      %c-1_i32 = arith.constant -1 : i32
      %420 = vector.broadcast %c-1_i32 : i32 to vector<1x256xi32>
      %421 = arith.cmpi sge, %40, %420 : vector<1x256xi32>
      %c15_i32 = arith.constant 15 : i32
      %422 = vector.broadcast %c15_i32 : i32 to vector<1x256xi32>
      %423 = arith.cmpi slt, %40, %422 : vector<1x256xi32>
      %424 = arith.andi %421, %423 : vector<1x256xi1>
      %425 = arith.extui %424 : vector<1x256xi1> to vector<1x256xi32>
      %426 = arith.sitofp %425 : vector<1x256xi32> to vector<1x256xf32>
      %427 = arith.mulf %426, %419 : vector<1x256xf32>
      %cst_33 = arith.constant 0.000000e+00 : f32
      %428 = vector.broadcast %cst_33 : f32 to vector<1x256xf32>
      %429 = vector.extract_strided_slice %23 {offsets = [0, 5], sizes = [1, 256], strides = [1, 1]} : vector<2x384xf32> to vector<1x256xf32>
      %c5 = arith.constant 5 : index
      %430 = memref.load %arg2[%c5] : memref<98xf32, #tpu.memory_space<smem>>
      %431 = vector.broadcast %430 : f32 to vector<1x256xf32>
      %432 = arith.mulf %429, %431 : vector<1x256xf32>
      %433 = vector.extract_strided_slice %23 {offsets = [1, 5], sizes = [1, 256], strides = [1, 1]} : vector<2x384xf32> to vector<1x256xf32>
      %c54 = arith.constant 54 : index
      %434 = memref.load %arg2[%c54] : memref<98xf32, #tpu.memory_space<smem>>
      %435 = vector.broadcast %434 : f32 to vector<1x256xf32>
      %436 = arith.mulf %433, %435 : vector<1x256xf32>
      %437 = arith.addf %432, %436 : vector<1x256xf32>
      %438 = arith.addf %428, %437 : vector<1x256xf32>
      %439 = vector.extract_strided_slice %23 {offsets = [0, 21], sizes = [1, 256], strides = [1, 1]} : vector<2x384xf32> to vector<1x256xf32>
      %c12 = arith.constant 12 : index
      %440 = memref.load %arg2[%c12] : memref<98xf32, #tpu.memory_space<smem>>
      %441 = vector.broadcast %440 : f32 to vector<1x256xf32>
      %442 = arith.mulf %439, %441 : vector<1x256xf32>
      %443 = vector.extract_strided_slice %23 {offsets = [1, 21], sizes = [1, 256], strides = [1, 1]} : vector<2x384xf32> to vector<1x256xf32>
      %c61 = arith.constant 61 : index
      %444 = memref.load %arg2[%c61] : memref<98xf32, #tpu.memory_space<smem>>
      %445 = vector.broadcast %444 : f32 to vector<1x256xf32>
      %446 = arith.mulf %443, %445 : vector<1x256xf32>
      %447 = arith.addf %442, %446 : vector<1x256xf32>
      %448 = arith.addf %438, %447 : vector<1x256xf32>
      %449 = vector.extract_strided_slice %23 {offsets = [0, 37], sizes = [1, 256], strides = [1, 1]} : vector<2x384xf32> to vector<1x256xf32>
      %c19 = arith.constant 19 : index
      %450 = memref.load %arg2[%c19] : memref<98xf32, #tpu.memory_space<smem>>
      %451 = vector.broadcast %450 : f32 to vector<1x256xf32>
      %452 = arith.mulf %449, %451 : vector<1x256xf32>
      %453 = vector.extract_strided_slice %23 {offsets = [1, 37], sizes = [1, 256], strides = [1, 1]} : vector<2x384xf32> to vector<1x256xf32>
      %c68 = arith.constant 68 : index
      %454 = memref.load %arg2[%c68] : memref<98xf32, #tpu.memory_space<smem>>
      %455 = vector.broadcast %454 : f32 to vector<1x256xf32>
      %456 = arith.mulf %453, %455 : vector<1x256xf32>
      %457 = arith.addf %452, %456 : vector<1x256xf32>
      %458 = arith.addf %448, %457 : vector<1x256xf32>
      %459 = vector.extract_strided_slice %23 {offsets = [0, 53], sizes = [1, 256], strides = [1, 1]} : vector<2x384xf32> to vector<1x256xf32>
      %c26 = arith.constant 26 : index
      %460 = memref.load %arg2[%c26] : memref<98xf32, #tpu.memory_space<smem>>
      %461 = vector.broadcast %460 : f32 to vector<1x256xf32>
      %462 = arith.mulf %459, %461 : vector<1x256xf32>
      %463 = vector.extract_strided_slice %23 {offsets = [1, 53], sizes = [1, 256], strides = [1, 1]} : vector<2x384xf32> to vector<1x256xf32>
      %c75 = arith.constant 75 : index
      %464 = memref.load %arg2[%c75] : memref<98xf32, #tpu.memory_space<smem>>
      %465 = vector.broadcast %464 : f32 to vector<1x256xf32>
      %466 = arith.mulf %463, %465 : vector<1x256xf32>
      %467 = arith.addf %462, %466 : vector<1x256xf32>
      %468 = arith.addf %458, %467 : vector<1x256xf32>
      %469 = vector.extract_strided_slice %23 {offsets = [0, 69], sizes = [1, 256], strides = [1, 1]} : vector<2x384xf32> to vector<1x256xf32>
      %c33 = arith.constant 33 : index
      %470 = memref.load %arg2[%c33] : memref<98xf32, #tpu.memory_space<smem>>
      %471 = vector.broadcast %470 : f32 to vector<1x256xf32>
      %472 = arith.mulf %469, %471 : vector<1x256xf32>
      %473 = vector.extract_strided_slice %23 {offsets = [1, 69], sizes = [1, 256], strides = [1, 1]} : vector<2x384xf32> to vector<1x256xf32>
      %c82 = arith.constant 82 : index
      %474 = memref.load %arg2[%c82] : memref<98xf32, #tpu.memory_space<smem>>
      %475 = vector.broadcast %474 : f32 to vector<1x256xf32>
      %476 = arith.mulf %473, %475 : vector<1x256xf32>
      %477 = arith.addf %472, %476 : vector<1x256xf32>
      %478 = arith.addf %468, %477 : vector<1x256xf32>
      %479 = vector.extract_strided_slice %23 {offsets = [0, 85], sizes = [1, 256], strides = [1, 1]} : vector<2x384xf32> to vector<1x256xf32>
      %c40 = arith.constant 40 : index
      %480 = memref.load %arg2[%c40] : memref<98xf32, #tpu.memory_space<smem>>
      %481 = vector.broadcast %480 : f32 to vector<1x256xf32>
      %482 = arith.mulf %479, %481 : vector<1x256xf32>
      %483 = vector.extract_strided_slice %23 {offsets = [1, 85], sizes = [1, 256], strides = [1, 1]} : vector<2x384xf32> to vector<1x256xf32>
      %c89 = arith.constant 89 : index
      %484 = memref.load %arg2[%c89] : memref<98xf32, #tpu.memory_space<smem>>
      %485 = vector.broadcast %484 : f32 to vector<1x256xf32>
      %486 = arith.mulf %483, %485 : vector<1x256xf32>
      %487 = arith.addf %482, %486 : vector<1x256xf32>
      %488 = arith.addf %478, %487 : vector<1x256xf32>
      %489 = vector.extract_strided_slice %23 {offsets = [0, 101], sizes = [1, 256], strides = [1, 1]} : vector<2x384xf32> to vector<1x256xf32>
      %c47 = arith.constant 47 : index
      %490 = memref.load %arg2[%c47] : memref<98xf32, #tpu.memory_space<smem>>
      %491 = vector.broadcast %490 : f32 to vector<1x256xf32>
      %492 = arith.mulf %489, %491 : vector<1x256xf32>
      %493 = vector.extract_strided_slice %23 {offsets = [1, 101], sizes = [1, 256], strides = [1, 1]} : vector<2x384xf32> to vector<1x256xf32>
      %c96 = arith.constant 96 : index
      %494 = memref.load %arg2[%c96] : memref<98xf32, #tpu.memory_space<smem>>
      %495 = vector.broadcast %494 : f32 to vector<1x256xf32>
      %496 = arith.mulf %493, %495 : vector<1x256xf32>
      %497 = arith.addf %492, %496 : vector<1x256xf32>
      %498 = arith.addf %488, %497 : vector<1x256xf32>
      %c-2_i32 = arith.constant -2 : i32
      %499 = vector.broadcast %c-2_i32 : i32 to vector<1x256xi32>
      %500 = arith.cmpi sge, %40, %499 : vector<1x256xi32>
      %c14_i32 = arith.constant 14 : i32
      %501 = vector.broadcast %c14_i32 : i32 to vector<1x256xi32>
      %502 = arith.cmpi slt, %40, %501 : vector<1x256xi32>
      %503 = arith.andi %500, %502 : vector<1x256xi1>
      %504 = arith.extui %503 : vector<1x256xi1> to vector<1x256xi32>
      %505 = arith.sitofp %504 : vector<1x256xi32> to vector<1x256xf32>
      %506 = arith.mulf %505, %498 : vector<1x256xf32>
      %cst_34 = arith.constant 0.000000e+00 : f32
      %507 = vector.broadcast %cst_34 : f32 to vector<1x256xf32>
      %508 = vector.extract_strided_slice %23 {offsets = [0, 6], sizes = [1, 256], strides = [1, 1]} : vector<2x384xf32> to vector<1x256xf32>
      %c6 = arith.constant 6 : index
      %509 = memref.load %arg2[%c6] : memref<98xf32, #tpu.memory_space<smem>>
      %510 = vector.broadcast %509 : f32 to vector<1x256xf32>
      %511 = arith.mulf %508, %510 : vector<1x256xf32>
      %512 = vector.extract_strided_slice %23 {offsets = [1, 6], sizes = [1, 256], strides = [1, 1]} : vector<2x384xf32> to vector<1x256xf32>
      %c55 = arith.constant 55 : index
      %513 = memref.load %arg2[%c55] : memref<98xf32, #tpu.memory_space<smem>>
      %514 = vector.broadcast %513 : f32 to vector<1x256xf32>
      %515 = arith.mulf %512, %514 : vector<1x256xf32>
      %516 = arith.addf %511, %515 : vector<1x256xf32>
      %517 = arith.addf %507, %516 : vector<1x256xf32>
      %518 = vector.extract_strided_slice %23 {offsets = [0, 22], sizes = [1, 256], strides = [1, 1]} : vector<2x384xf32> to vector<1x256xf32>
      %c13 = arith.constant 13 : index
      %519 = memref.load %arg2[%c13] : memref<98xf32, #tpu.memory_space<smem>>
      %520 = vector.broadcast %519 : f32 to vector<1x256xf32>
      %521 = arith.mulf %518, %520 : vector<1x256xf32>
      %522 = vector.extract_strided_slice %23 {offsets = [1, 22], sizes = [1, 256], strides = [1, 1]} : vector<2x384xf32> to vector<1x256xf32>
      %c62 = arith.constant 62 : index
      %523 = memref.load %arg2[%c62] : memref<98xf32, #tpu.memory_space<smem>>
      %524 = vector.broadcast %523 : f32 to vector<1x256xf32>
      %525 = arith.mulf %522, %524 : vector<1x256xf32>
      %526 = arith.addf %521, %525 : vector<1x256xf32>
      %527 = arith.addf %517, %526 : vector<1x256xf32>
      %528 = vector.extract_strided_slice %23 {offsets = [0, 38], sizes = [1, 256], strides = [1, 1]} : vector<2x384xf32> to vector<1x256xf32>
      %c20 = arith.constant 20 : index
      %529 = memref.load %arg2[%c20] : memref<98xf32, #tpu.memory_space<smem>>
      %530 = vector.broadcast %529 : f32 to vector<1x256xf32>
      %531 = arith.mulf %528, %530 : vector<1x256xf32>
      %532 = vector.extract_strided_slice %23 {offsets = [1, 38], sizes = [1, 256], strides = [1, 1]} : vector<2x384xf32> to vector<1x256xf32>
      %c69 = arith.constant 69 : index
      %533 = memref.load %arg2[%c69] : memref<98xf32, #tpu.memory_space<smem>>
      %534 = vector.broadcast %533 : f32 to vector<1x256xf32>
      %535 = arith.mulf %532, %534 : vector<1x256xf32>
      %536 = arith.addf %531, %535 : vector<1x256xf32>
      %537 = arith.addf %527, %536 : vector<1x256xf32>
      %538 = vector.extract_strided_slice %23 {offsets = [0, 54], sizes = [1, 256], strides = [1, 1]} : vector<2x384xf32> to vector<1x256xf32>
      %c27 = arith.constant 27 : index
      %539 = memref.load %arg2[%c27] : memref<98xf32, #tpu.memory_space<smem>>
      %540 = vector.broadcast %539 : f32 to vector<1x256xf32>
      %541 = arith.mulf %538, %540 : vector<1x256xf32>
      %542 = vector.extract_strided_slice %23 {offsets = [1, 54], sizes = [1, 256], strides = [1, 1]} : vector<2x384xf32> to vector<1x256xf32>
      %c76 = arith.constant 76 : index
      %543 = memref.load %arg2[%c76] : memref<98xf32, #tpu.memory_space<smem>>
      %544 = vector.broadcast %543 : f32 to vector<1x256xf32>
      %545 = arith.mulf %542, %544 : vector<1x256xf32>
      %546 = arith.addf %541, %545 : vector<1x256xf32>
      %547 = arith.addf %537, %546 : vector<1x256xf32>
      %548 = vector.extract_strided_slice %23 {offsets = [0, 70], sizes = [1, 256], strides = [1, 1]} : vector<2x384xf32> to vector<1x256xf32>
      %c34 = arith.constant 34 : index
      %549 = memref.load %arg2[%c34] : memref<98xf32, #tpu.memory_space<smem>>
      %550 = vector.broadcast %549 : f32 to vector<1x256xf32>
      %551 = arith.mulf %548, %550 : vector<1x256xf32>
      %552 = vector.extract_strided_slice %23 {offsets = [1, 70], sizes = [1, 256], strides = [1, 1]} : vector<2x384xf32> to vector<1x256xf32>
      %c83 = arith.constant 83 : index
      %553 = memref.load %arg2[%c83] : memref<98xf32, #tpu.memory_space<smem>>
      %554 = vector.broadcast %553 : f32 to vector<1x256xf32>
      %555 = arith.mulf %552, %554 : vector<1x256xf32>
      %556 = arith.addf %551, %555 : vector<1x256xf32>
      %557 = arith.addf %547, %556 : vector<1x256xf32>
      %558 = vector.extract_strided_slice %23 {offsets = [0, 86], sizes = [1, 256], strides = [1, 1]} : vector<2x384xf32> to vector<1x256xf32>
      %c41 = arith.constant 41 : index
      %559 = memref.load %arg2[%c41] : memref<98xf32, #tpu.memory_space<smem>>
      %560 = vector.broadcast %559 : f32 to vector<1x256xf32>
      %561 = arith.mulf %558, %560 : vector<1x256xf32>
      %562 = vector.extract_strided_slice %23 {offsets = [1, 86], sizes = [1, 256], strides = [1, 1]} : vector<2x384xf32> to vector<1x256xf32>
      %c90 = arith.constant 90 : index
      %563 = memref.load %arg2[%c90] : memref<98xf32, #tpu.memory_space<smem>>
      %564 = vector.broadcast %563 : f32 to vector<1x256xf32>
      %565 = arith.mulf %562, %564 : vector<1x256xf32>
      %566 = arith.addf %561, %565 : vector<1x256xf32>
      %567 = arith.addf %557, %566 : vector<1x256xf32>
      %568 = vector.extract_strided_slice %23 {offsets = [0, 102], sizes = [1, 256], strides = [1, 1]} : vector<2x384xf32> to vector<1x256xf32>
      %c48 = arith.constant 48 : index
      %569 = memref.load %arg2[%c48] : memref<98xf32, #tpu.memory_space<smem>>
      %570 = vector.broadcast %569 : f32 to vector<1x256xf32>
      %571 = arith.mulf %568, %570 : vector<1x256xf32>
      %572 = vector.extract_strided_slice %23 {offsets = [1, 102], sizes = [1, 256], strides = [1, 1]} : vector<2x384xf32> to vector<1x256xf32>
      %c97 = arith.constant 97 : index
      %573 = memref.load %arg2[%c97] : memref<98xf32, #tpu.memory_space<smem>>
      %574 = vector.broadcast %573 : f32 to vector<1x256xf32>
      %575 = arith.mulf %572, %574 : vector<1x256xf32>
      %576 = arith.addf %571, %575 : vector<1x256xf32>
      %577 = arith.addf %567, %576 : vector<1x256xf32>
      %c-3_i32 = arith.constant -3 : i32
      %578 = vector.broadcast %c-3_i32 : i32 to vector<1x256xi32>
      %579 = arith.cmpi sge, %40, %578 : vector<1x256xi32>
      %c13_i32 = arith.constant 13 : i32
      %580 = vector.broadcast %c13_i32 : i32 to vector<1x256xi32>
      %581 = arith.cmpi slt, %40, %580 : vector<1x256xi32>
      %582 = arith.andi %579, %581 : vector<1x256xi1>
      %583 = arith.extui %582 : vector<1x256xi1> to vector<1x256xi32>
      %584 = arith.sitofp %583 : vector<1x256xi32> to vector<1x256xf32>
      %585 = arith.mulf %584, %577 : vector<1x256xf32>
      %586 = arith.addf %119, %198 : vector<1x256xf32>
      %587 = arith.addf %277, %348 : vector<1x256xf32>
      %588 = arith.addf %586, %587 : vector<1x256xf32>
      %589 = arith.addf %427, %506 : vector<1x256xf32>
      %590 = arith.addf %589, %585 : vector<1x256xf32>
      %591 = arith.addf %588, %590 : vector<1x256xf32>
      %c0_35 = arith.constant 0 : index
      %592 = memref.load %arg3[%c0_35] : memref<1xf32, #tpu.memory_space<smem>>
      %593 = vector.broadcast %592 : f32 to vector<1x256xf32>
      %594 = arith.addf %591, %593 : vector<1x256xf32>
      %cst_36 = arith.constant 0.000000e+00 : f32
      %595 = vector.broadcast %cst_36 : f32 to vector<1x256xf32>
      %596 = arith.maximumf %594, %595 : vector<1x256xf32>
      %597 = arith.negf %596 : vector<1x256xf32>
      %598 = math.exp %597 : vector<1x256xf32>
      %cst_37 = arith.constant 1.000000e+00 : f32
      %599 = vector.broadcast %cst_37 : f32 to vector<1x256xf32>
      %600 = arith.addf %599, %598 : vector<1x256xf32>
      %601 = arith.divf %599, %600 : vector<1x256xf32>
      %c0_38 = arith.constant 0 : index
      %c0_39 = arith.constant 0 : index
      %602 = vector.load %arg7[%c0_38, %c0_39] : memref<1x256xf32, #tpu.memory_space<vmem>>, vector<1x256xf32>
      tpu.vector_store %arg7[%c0_38, %c0_39], %601 {strides = array<i32>} : memref<1x256xf32, #tpu.memory_space<vmem>>, vector<1x256xf32>,
    } else {
    }
    %c0 = arith.constant 0 : index
    %c0_1 = arith.constant 0 : index
    %c0_2 = arith.constant 0 : index
    %3 = vector.load %arg4[%c0, %c0_1, %c0_2] : memref<1x4x256xf32, #tpu.memory_space<vmem>>, vector<1x4x256xf32>
    %4 = vector.shape_cast %3 : vector<1x4x256xf32> to vector<4x256xf32>
    %c0_3 = arith.constant 0 : index
    %c0_4 = arith.constant 0 : index
    %5 = vector.load %arg7[%c0_3, %c0_4] : memref<1x256xf32, #tpu.memory_space<vmem>>, vector<1x256xf32>
    %6 = vector.broadcast %5 : vector<1x256xf32> to vector<4x256xf32>
    %7 = arith.mulf %4, %6 : vector<4x256xf32>
    %c0_5 = arith.constant 0 : index
    %c0_6 = arith.constant 0 : index
    %c0_7 = arith.constant 0 : index
    %8 = vector.load %arg6[%c0_5, %c0_6, %c0_7] : memref<1x4x256xf32, #tpu.memory_space<vmem>>, vector<1x4x256xf32>
    %9 = vector.shape_cast %8 : vector<1x4x256xf32> to vector<4x256xf32>
    %10 = vector.shape_cast %7 : vector<4x256xf32> to vector<1x4x256xf32>
    tpu.vector_store %arg6[%c0_5, %c0_6, %c0_7], %10 {strides = array<i32>} : memref<1x4x256xf32, #tpu.memory_space<vmem>>, vector<1x4x256xf32>,
    return
  }
  func.func @transform_0(%arg0: i32, %arg1: i32) -> i32 {
    %c0_i32 = arith.constant 0 : i32
    %c0_i32_0 = arith.constant 0 : i32
    return %c0_i32 : i32
  }
  func.func @transform_1(%arg0: i32, %arg1: i32) -> i32 {
    %c0_i32 = arith.constant 0 : i32
    %c0_i32_0 = arith.constant 0 : i32
    return %c0_i32 : i32
  }
  func.func @transform_2(%arg0: i32, %arg1: i32) -> (i32, i32, i32) {
    %c0_i32 = arith.constant 0 : i32
    %c0_i32_0 = arith.constant 0 : i32
    return %arg0, %arg1, %c0_i32 : i32, i32, i32
  }
  func.func @transform_3(%arg0: i32, %arg1: i32) -> (i32, i32, i32) {
    %c0_i32 = arith.constant 0 : i32
    %c0_i32_0 = arith.constant 0 : i32
    %c0_i32_1 = arith.constant 0 : i32
    return %arg0, %c0_i32, %c0_i32_0 : i32, i32, i32
  }
  func.func @transform_4(%arg0: i32, %arg1: i32) -> (i32, i32, i32) {
    %c0_i32 = arith.constant 0 : i32
    %c0_i32_0 = arith.constant 0 : i32
    return %arg0, %arg1, %c0_i32 : i32, i32, i32
  }
}

</mosaic_0001>

<bundles_post_ra>
// kernel: tpu_custom_call.1
= control target key start
LH: loop header
LB: loop body
LE: loop exit
PB: predicated region body
PF: predicated region fallthrough
CT: control target
= control target key end

     0   :  { %s3014_s0 = inlined_call_operand.vmem [shape: f32[98], index: 0, kind: input, shape index: {}]   ;;  %s3015_s1 = inlined_call_operand.<no memory space> [shape: f32[1], index: 1, kind: input, shape index: {}]   ;;  %s3016_s2 = inlined_call_operand.hbm [shape: f32[2,4,256], index: 2, kind: input, shape index: {}]   ;;  %s3017_s3 = inlined_call_operand.hbm [shape: f32[2,4,256], index: 3, kind: input, shape index: {}]   ;;  %s3018_s4 = inlined_call_operand.hbm [shape: f32[2,4,256], index: 4, kind: output, shape index: {}]  }
   0x1   :  { %3021 = sst [smem:[#allocation17_spill]] %s3014_s0 }
   0x2   :  { %9 = sst [smem:[#allocation4]] %s3015_s1 }
   0x3   :  { %10 = vsyncpa [#allocation8], 0 }
   0x4   :  { %11 = vsyncpa [#allocation6], 0 }
   0x5   :  { %13 = vsyncpa [#allocation6 + $0x1], 0 }
   0x6   :  { %14 = vsyncpa [#allocation11], 0 }
   0x7   :  { %16 = vsyncpa [#allocation11 + $0x1], 0 }
   0x8   :  { %17 = vsyncpa [#allocation7], 0 }
   0x9   :  { %19 = vsyncpa [#allocation7 + $0x1], 0  ;;  %s2176_s17 = smov 0   ;;  %s2178_s18 = smov 0  }
   0xa   :  { %s2180_s19 = smov 0   ;;  %s2182_s20 = smov 0  }
   0xb   :  { %s2184_s21 = smov 0   ;;  %s2186_s22 = smov 0  }
   0xc LB: > { %s1681_s1 = sadd.s32 4294967295, %s2127_s22   ;;  %s1682_s23 = sadd.s32 4294967294, %s2127_s22   ;;  %s2127_s22 = sphi %s2186_s22, %s25_s22   ;;  %s2123_s21 = sphi %s2184_s21, %s3044_s21   ;;  %s2119_s20 = sphi %s2182_s20, %s3043_s20   ;;  %s2115_s19 = sphi %s2180_s19, %s3042_s19   ;;  %s2111_s18 = sphi %s2178_s18, %s3041_s18   ;;  %s2107_s17 = sphi %s2176_s17, %s3040_s17  }
   0xd   : > { %p101_p0 = scmp.ne.s32.totalorder %s2111_s18, %s2107_s17  ;;  %p2210_p1 = scmp.eq.s32.totalorder %s1681_s1, 0 }
   0xe   : > { %p2214_p2 = scmp.eq.s32.totalorder %s1681_s1, 1  ;;  %p159_p3 = scmp.eq.s32.totalorder %s1682_s23, 1 }
   0xf   : > { %p2220_p4 = por %p2210_p1, %p101_p0  ;;  %p1683_p5 = scmp.ge.s32.totalorder %s2127_s22, 1 }
  0x10   : > { %p2225_p6 = por %p159_p3, %p101_p0  ;;  %p166_p7 = scmp.lt.s32.totalorder %s2127_s22, 3 }
  0x11   : > { %s3024_s26 = scalar_select %p2220_p4, 1, 0 }
  0x12   : > { %s3025_s27 = scalar_select %p2225_p6, 1, 0 }
  0x13   : > { %s3026_s0 = sld [smem:[#allocation17_spill]]  ;;  %p2233_p8 = pnand %p1683_p5, %p166_p7 }
  0x14   : > { %s37_s7 = sadd.s32 1, %s2123_s21  ;;  %s88_s8 = sadd.s32 1, %s2115_s19 }
  0x15   : > { %p1875_p10 = pneg %p2233_p8  ;;  %p39_p12 = scmp.ge.s32.totalorder %s37_s7, 2 }
  0x17   : > { %p2242_p11 = pnand %p1875_p10, %p2210_p1 }
  0x19   : > { %s179_s30 = sshll.u32 %s3026_s0, 4  ;;  %p1970_p0 = pneg %p2242_p11  ;;  %s180_s30 = int_to_ptr.vmem [resolvable:$true] %s179_s30 }
  0x1a   : > { %s1968_s9 = scalar_lea.vmem %s180_s30, 16  ;;  %p1976_p7 = scmp.lt.s32.totalorder %s180_s30, %s180_s30 }
  0x1b   : > { %p1969_p13 = scmp.ne.s32.totalorder %s180_s30, %s1968_s9  ;;  %p1977_p6 = scmp.lt.s32.totalorder %s1968_s9, %s1968_s9 }
  0x1d   : > { %p1971_p3 = pnand %p1970_p0, %p1969_p13  ;;  %p1978_p9 = por %p1977_p6, %p1976_p7 }
  0x1f   : > { %p1972_p5 = pneg %p1971_p3 }
  0x21   : > { %p1979_p4 = pnand %p1978_p9, %p1972_p5 }
  0x23   : > { %1982 = shalt.err (!%p1979_p4)
}
  0x24   : > { %s2129_s10 = smov [#allocation5]   ;;  %s3046_s7 = smov (%p39_p12, %s37_s7), 0 }
  0x25   : > { %1878 = dma.vmem_to_smem (!%p2242_p11), %s180_s30, 16, %s2129_s10, [#allocation8]  }
  0x26   : > { %p95_p10 = scmp.ne.s32.totalorder %s2115_s19, %s2111_s18  ;;  %p96_p6 = scmp.eq.s32.totalorder %s2127_s22, 0 }
  0x27   : > { %s83_s11 = ssub.s32 %s2123_s21, %s3046_s7  ;;  %p1891_p4 = scmp.lt.s32.totalorder %s2127_s22, 2 }
  0x28   : > { %p86_p9 = scmp.eq.s32.totalorder %s83_s11, 0  ;;  %p97_p13 = por %p96_p6, %p95_p10 }
  0x29   : > { %p2262_p0 = por %p2214_p2, %p95_p10  ;;  %s2267_s13 = sand.u32 1, %s2115_s19  }
  0x2a   : > { %s2270_s14 = scalar_select %p86_p9, %s2115_s19, %s88_s8  }
  0x2b   : > { %s1686_s15 = sshll.u32 %s2267_s13, 3  ;;  %s1862_s16 = sshll.u32 %s2123_s21, 7 }
  0x2c   : > { %s205_s28 = scalar_lea.hbm %s3016_s2, %s1862_s16  ;;  %s197_s29 = scalar_lea.vmem [#allocation9], %s1686_s15 }
  0x2d   : > { %s207_s30 = sshll.u32 %s197_s29, 4  ;;  %p2277_p11 = pnand %p1891_p4, %p97_p13  ;;  %s208_s30 = int_to_ptr.vmem [resolvable:$true] %s207_s30 }
  0x2e   : > { %s2284_s8 = scalar_lea.hbm %s3017_s3, %s1862_s16  ;;  %s194_s10 = scalar_lea.sflag [#allocation6], %s2267_s13 }
  0x2f   : > { %p1985_p2 = pneg %p2277_p11  ;;  %s1996_s11 = scalar_lea.vmem %s208_s30, 128 }
  0x30   : > { %p1997_p12 = scmp.ne.s32.totalorder %s208_s30, %s1996_s11  ;;  %s2130_s1 = smov [#allocation9]  }
  0x31   : > { %s2001_s23 = sshll.u32 %s2130_s1, 4  ;;  %s2002_s23 = int_to_ptr.vmem [resolvable:$false] %s2001_s23 }
  0x32   : > { %p1999_p3 = pnand %p1997_p12, %p1985_p2  ;;  %s2003_s29 = scalar_lea.vmem %s2002_s23, 256 }
  0x33   : > { %p2004_p7 = scmp.lt.s32.totalorder %s208_s30, %s2002_s23  ;;  %p2005_p10 = scmp.lt.s32.totalorder %s2003_s29, %s1996_s11 }
  0x34   : > { %p2000_p5 = pneg %p1999_p3 }
  0x35   : > { %p2006_p6 = por %p2005_p10, %p2004_p7 }
  0x37   : > { %p2007_p4 = pnand %p2006_p6, %p2000_p5 }
  0x39   : > { %2010 = shalt.err (!%p2007_p4)
}
  0x3a   : > { %1882 = dma.hbm_to_vmem [thread:$0]  (!%p2277_p11), %s205_s28, 128, %s208_s30, %s194_s10  }
  0x3b   : > { %s218_s16 = scalar_lea.vmem [#allocation10], %s1686_s15  ;;  %s215_s9 = scalar_lea.sflag [#allocation11], %s2267_s13 }
  0x3c   : > { %s226_s6 = sshll.u32 %s218_s16, 4  ;;  %s2131_s1 = smov [#allocation10]   ;;  %s227_s6 = int_to_ptr.vmem [resolvable:$true] %s226_s6 }
  0x3d   : > { %s2024_s0 = scalar_lea.vmem %s227_s6, 128  ;;  %s2029_s11 = sshll.u32 %s2131_s1, 4  ;;  %s2030_s11 = int_to_ptr.vmem [resolvable:$false] %s2029_s11 }
  0x3e   : > { %p2025_p9 = scmp.ne.s32.totalorder %s227_s6, %s2024_s0  ;;  %s2031_s23 = scalar_lea.vmem %s2030_s11, 256 }
  0x3f   : > { %p2032_p3 = scmp.lt.s32.totalorder %s227_s6, %s2030_s11  ;;  %p2033_p5 = scmp.lt.s32.totalorder %s2031_s23, %s2024_s0 }
  0x40   : > { %p2027_p13 = pnand %p2025_p9, %p1985_p2 }
  0x41   : > { %p2034_p7 = por %p2033_p5, %p2032_p3 }
  0x42   : > { %p2028_p12 = pneg %p2027_p13 }
  0x44   : > { %p2035_p10 = pnand %p2034_p7, %p2028_p12 }
  0x46   : > { %2038 = shalt.err (!%p2035_p10)
}
  0x47   : > { %1885 = dma.hbm_to_vmem [thread:$0]  (!%p2277_p11), %s2284_s8, 128, %s227_s6, %s215_s9  }
  0x48   : > { %235 = sbr.rel (%p2233_p8) target bundleno = 646 (0x286), region = 36 }
  0x4d   : > { %2090 = dma.done.wait (%p2210_p1), [#allocation8], 16  }
  0x4e   : > { %2092 = vsyncadd (%p2210_p1), [#allocation8], 4294967280  ;;  %s2308_s13 = sand.u32 1, %s2111_s18   ;;  %p3031_p11 = scmp.ne.s32.totalorder %s3024_s26, 0 }
  0x4f   : > { %s2311_s0 = sshll.u32 %s2308_s13, 3  ;;  %s242_s15 = scalar_lea.sflag [#allocation6], %s2308_s13 }
  0x50   : > { %2094 = dma.done.wait (%p3031_p11), %s242_s15, 128  }
  0x51   : > { %2096 = vsyncadd (%p3031_p11), %s242_s15, 4294967168  ;;  %s251_s24 = scalar_lea.sflag [#allocation11], %s2308_s13  ;;  %s254_s5 = scalar_lea.vmem [#allocation10], %s2311_s0 }
  0x52   : > { %2098 = dma.done.wait (%p3031_p11), %s251_s24, 128  }
  0x53   : > { %2100 = vsyncadd (%p3031_p11), %s251_s24, 4294967168 }
  0x54   : > { %259 = sfence }
  0x55   : > { %v289_v0 = vld [vmem:[%s254_s5] sm:$0xff]  ;;  %vm293_vm0 = vcmask 1043456   ;;  %v2132_v4 = vmov 0.0   ;;  %v2133_v17 = vmov 1966171168   ;;  %v331_v19 = vlaneseq  ;;  %s2134_s26 = smov 51  }
  0x56   : > { %v291_v1 = vcombine.high %v289_v0, %v289_v0  ;;  %v294_v2 = vsel %vm293_vm0, %v289_v0, 0.0  ;;  %v310_v3 = vsel %vm293_vm0, %v289_v0, -inf  ;;  %324 = vst [vmem:[#allocation3] sm:$0x3f] %v2132_v4  ;;  %v329_v18 = vunpack.c.l.s4 %v2133_v17  ;;  %s2350_s30 = sld [smem:[#allocation5 + $0xb]] }
  0x57   : > { %v295_v5 = vrot.slane %v294_v2, 4  ;;  %v311_v6 = vrot.slane %v310_v3, 4  ;;  %v2327_v29 = vshrl.u32 %v331_v19, 7  ;;  %vm2337_vm1 = vcmp.ge.s32.totalorder %v331_v19, 51  ;;  %s1790_s25 = sld [smem:[#allocation5 + $0x3c]] }
  0x58   : > { %v301_v7 = vsel %vm293_vm0, %v291_v1, 0.0  ;;  %v317_v8 = vsel %vm293_vm0, %v291_v1, -inf  ;;  %v330_v28 = vunpack.c.0.s8 %v329_v18  ;;  %vm2342_vm2 = vcmp.lt.s32.totalorder %v331_v19, 307  ;;  %s2352_s8 = sld [smem:[#allocation5 + $0x8]] }
  0x59   : > { %v296_v9 = vadd.f32 %v295_v5, %v294_v2  ;;  %v302_v10 = vrot.slane %v301_v7, 4  ;;  %v312_v11 = vmax.f32 %v310_v3, %v311_v6  ;;  %v318_v12 = vrot.slane %v317_v8, 4  ;;  %vm351_vm4 = vmand %vm2337_vm1, %vm2342_vm2  ;;  %s1723_s10 = sld [smem:[#allocation5 + $0x39]] }
  0x5a   : > { %v2330_v38 = vsub.s32 %v330_v28, %v2327_v29  ;;  %vm345_vm3 = vcmask 416768   ;;  %s1726_s29 = sld [smem:[#allocation5 + $0x40]]  ;;  %vm432_vm5 = vcmask 916480   ;;  %vm451_vm6 = vcmask 785408  }
  0x5b   : > { %v297_v13 = vrot.slane %v296_v9, 2  ;;  %v303_v14 = vadd.f32 %v302_v10, %v301_v7  ;;  %v313_v15 = vrot.slane %v312_v11, 2  ;;  %v319_v16 = vmax.f32 %v317_v8, %v318_v12  ;;  %s1746_s16 = sld [smem:[#allocation5 + $0x3a]] }
  0x5c   : > { %s2354_s6 = sld [smem:[#allocation5 + $0xf]]  ;;  %v999_v58 = vstv %s2350_s30  ;;  %vm470_vm7 = vcmask 654336   ;;  %vm489_vm8 = vcmask 523264   ;;  %vm508_vm9 = vcmask 392192  }
  0x5d   : > { %v298_v20 = vadd.f32 %v297_v13, %v296_v9  ;;  %v304_v21 = vrot.slane %v303_v14, 2  ;;  %v314_v22 = vmax.f32 %v312_v11, %v313_v15  ;;  %v320_v23 = vrot.slane %v319_v16, 2  ;;  %s2356_s9 = sld [smem:[#allocation5 + $0x3b]] }
  0x5e   : > { %s2358_s1 = sld [smem:[#allocation5 + $0x3d]]  ;;  %v1002_v53 = vstv %s1790_s25  ;;  %v567_v59 = vstv %s2352_s8  ;;  %vm527_vm10 = vcmask 261120   ;;  %vm703_vm0 = vcmask 1039360  }
  0x5f   : > { %v299_v24 = vrot.slane %v298_v20, 1  ;;  %v305_v25 = vadd.f32 %v304_v21, %v303_v14  ;;  %v315_v26 = vrot.slane %v314_v22, 1  ;;  %v321_v27 = vmax.f32 %v319_v16, %v320_v23  ;;  %s2360_s11 = sld [smem:[#allocation5 + $0x9]] }
  0x60   : > { %s2362_s23 = sld [smem:[#allocation5 + $0x44]]  ;;  %v570_v54 = vstv %s1723_s10  ;;  %v588_v55 = vstv %s1726_s29  ;;  %vm859_vm1 = vcmask 1031168  }
  0x61   : > { %v300_v30 = vadd.f32 %v299_v24, %v298_v20  ;;  %v306_v31 = vrot.slane %v305_v25, 1  ;;  %v316_v32 = vmax.f32 %v314_v22, %v315_v26  ;;  %v322_v33 = vrot.slane %v321_v27, 1  ;;  %s2364_s15 = sld [smem:[#allocation5 + $0xa]] }
  0x62   : > { %s2366_s24 = sld [smem:[#allocation5 + $0x41]]  ;;  %v726_v56 = vstv %s1746_s16  ;;  %v585_v63 = vstv %s2354_s6  ;;  %s2135_s6 = smov 112  }
  0x63   : > { %v307_v34 = vadd.f32 %v306_v31, %v305_v25  ;;  %v308_v35 = vmul.f32 0.25, %v300_v30  ;;  %v323_v36 = vmax.f32 %v321_v27, %v322_v33  ;;  %s2368_s5 = sld [smem:[#allocation5 + $0xc]]  ;;  %v882_v62 = vstv %s2356_s9 }
  0x64   : > { %s2379_s25 = sld [smem:[#allocation5 + $0x47]]  ;;  %v1158_v2 = vstv %s2358_s1 }
  0x65   : > { %v309_v37 = vmul.f32 0.25, %v307_v34  ;;  %v355_v39 = vcombine.low %v316_v32, %v323_v36  ;;  %s2385_s10 = sld [smem:[#allocation5 + $0x43]]  ;;  %v723_v9 = vstv %s2360_s11 }
  0x66   : > { %s2389_s30 = sld [smem:[#allocation5 + $0x10]]  ;;  %v1176_v11 = vstv %s2362_s23 }
  0x67   : > { %v327_v40 = vcombine.low %v308_v35, %v309_v37  ;;  %v362_v42 = vrot.slane %v355_v39, %v2330_v38  ;;  %s2394_s8 = sld [smem:[#allocation5 + $0x42]]  ;;  %v879_v20 = vstv %s2364_s15  ;;  %s3020_s15 = smov 96  }
  0x68   : > { %s2397_s29 = sld [smem:[#allocation5 + $0x16]]  ;;  %v744_v16 = vstv %s2366_s24 }
  0x69   : > { %v334_v41 = vrot.slane %v327_v40, %v2330_v38  ;;  %v369_v44 = vrot.slane %v362_v42, %v2330_v38  ;;  %s2400_s16 = sld [smem:[#allocation5 + $0x3e]]  ;;  %v1155_v22 = vstv %s2368_s5 }
  0x6a   : > { %s2407_s9 = sld [smem:[#allocation5 + $0x12]]  ;;  %v606_v30 = vstv %s2379_s25 }
  0x6b   : > { %v341_v43 = vrot.slane %v334_v41, %v2330_v38  ;;  %s2411_s1 = sld [smem:[#allocation5 + $0x4b]]  ;;  %v1020_v31 = vstv %s2385_s10 }
  0x6c   : > { %s2414_s11 = sld [smem:[#allocation5 + $0x11]]  ;;  %v741_v36 = vstv %s2389_s30 }
  0x6d   : > { %342 = vrot.lane.b32.xlu0 %v341_v43, %s2134_s26  ;;  %s2419_s23 = sld [smem:[#allocation5 + $0x48]]  ;;  %v900_v37 = vstv %s2394_s8 }
  0x6e   : > { %s2425_s24 = sld [smem:[#allocation5 + $0xd]]  ;;  %v603_v46 = vstv %s2397_s29 }
  0x6f   : > { %s2429_s5 = sld [smem:[#allocation5 + $0x1a]] }
  0x70   : > { %s2433_s25 = sld [smem:[#allocation5 + $0x4e]] }
  0x71   : > { %370 = vrot.lane.b32.xlu0 %v369_v44, %s2134_s26  ;;  %s2374_s26 = sld [smem:[#allocation5 + $0x13]]  ;;  %v1314_v44 = vstv %s2400_s16 }
  0x72   : > { %s2443_s10 = sld [smem:[#allocation5 + $0x17]] }
  0x73   : > { %s2448_s30 = sld [smem:[#allocation5 + $0x49]] }
  0x74   : > { %s2451_s8 = sld [smem:[#allocation5 + $0x1d]] }
  0x75   : > { %s2454_s29 = sld [smem:[#allocation5 + $0x45]] }
  0x76   : > { %s2461_s16 = sld [smem:[#allocation5 + $0x19]] }
  0x77   : > { %v1173_v33 = vstv %s2374_s26  ;;  %s2437_s26 = sld [smem:[#allocation5 + $0x4a]] }
  0x78   : > { %s2533_s28 = sld [smem:[#allocation5 + $0x1b]] }
  0xdf   : > { %v343_v47 = vpop.permute.xlu0 %342 }
  0xe0   : > { %v344_v48 = vrot.slane %v343_v47, 7 }
  0xe2   : > { %v346_v49 = vsel %vm345_vm3, %v344_v48, %v343_v47  ;;  %v1017_v48 = vstv %s2407_s9  ;;  %s2465_s9 = sld [smem:[#allocation5 + $0x52]] }
  0xe3   : > { %352 = vst.msk [vmem:[#allocation3] ss:$2 sm:$0x7] %vm351_vm4, %v346_v49  ;;  %v371_v50 = vpop.permute.xlu0 %370 }
  0xe4   : > { %v372_v51 = vrot.slane %v371_v50, 7 }
  0xe6   : > { %v373_v52 = vsel %vm345_vm3, %v372_v51, %v371_v50  ;;  %v1194_v50 = vstv %s2411_s1  ;;  %s2468_s1 = sld [smem:[#allocation5 + $0x18]]  ;;  %vm1291_vm3 = vcmask 1006592  }
  0xe7   : > { %376 = vst.msk [vmem:[#allocation3 + $0x1] ss:$2 sm:$0x7] %vm351_vm4, %v373_v52 }
  0xee   : > { %v2370_v57 = vld [vmem:[#allocation3] sm:$0x3f] }
  0xef   : > { %v1003_v60 = vmul.f32 %v1002_v53, %v2370_v57  ;;  %v571_v61 = vmul.f32 %v570_v54, %v2370_v57  ;;  %v589_v0 = vmul.f32 %v588_v55, %v2370_v57  ;;  %v727_v1 = vmul.f32 %v726_v56, %v2370_v57 }
  0xf0   : > { %v1000_v3 = vmul.f32 %v999_v58, %v2370_v57  ;;  %v568_v6 = vmul.f32 %v567_v59, %v2370_v57  ;;  %v883_v10 = vmul.f32 %v882_v62, %v2370_v57  ;;  %v1159_v15 = vmul.f32 %v1158_v2, %v2370_v57 }
  0xf1   : > { %v1791_v5 = vrot.slane %v1003_v60, 9  ;;  %v1724_v7 = vrot.slane %v571_v61, 9  ;;  %v1727_v8 = vrot.slane %v589_v0, 9  ;;  %v1747_v14 = vrot.slane %v727_v1, 9 }
  0xf2   : > { %v586_v17 = vmul.f32 %v585_v63, %v2370_v57  ;;  %v724_v18 = vmul.f32 %v723_v9, %v2370_v57  ;;  %v1770_v21 = vrot.slane %v883_v10, 9  ;;  %v1177_v23 = vmul.f32 %v1176_v11, %v2370_v57 }
  0xf3   : > { %v1008_v12 = vadd.f32 %v1791_v5, %v1000_v3  ;;  %v576_v13 = vadd.f32 %v1724_v7, %v568_v6  ;;  %v1814_v26 = vrot.slane %v1159_v15, 9  ;;  %v745_v27 = vmul.f32 %v744_v16, %v2370_v57 }
  0xf4   : > { %v594_v24 = vadd.f32 %v1727_v8, %v586_v17  ;;  %v732_v25 = vadd.f32 %v1747_v14, %v724_v18  ;;  %v880_v28 = vmul.f32 %v879_v20, %v2370_v57  ;;  %v1156_v32 = vmul.f32 %v1155_v22, %v2370_v57 }
  0xf5   : > { %1010 = vrot.lane.b32.xlu0 %v1008_v12, %s2135_s6  ;;  %578 = vrot.lane.b32.xlu1 %v576_v13, %s2135_s6  ;;  %v1817_v35 = vrot.slane %v1177_v23, 9  ;;  %v1750_v40 = vrot.slane %v745_v27, 9  ;;  %v607_v41 = vmul.f32 %v606_v30, %v2370_v57  ;;  %v1021_v42 = vmul.f32 %v1020_v31, %v2370_v57 }
  0xf6   : > { %v888_v34 = vadd.f32 %v1770_v21, %v880_v28  ;;  %v1164_v39 = vadd.f32 %v1814_v26, %v1156_v32  ;;  %v1174_v43 = vmul.f32 %v1173_v33, %v2370_v57  ;;  %v742_v45 = vmul.f32 %v741_v36, %v2370_v57 }
  0xf7   : > { %v901_v49 = vmul.f32 %v900_v37, %v2370_v57  ;;  %v1730_v52 = vrot.slane %v607_v41, 9  ;;  %v1794_v53 = vrot.slane %v1021_v42, 9  ;;  %v1315_v54 = vmul.f32 %v1314_v44, %v2370_v57 }
  0xf8   : > { %v1182_v47 = vadd.f32 %v1817_v35, %v1174_v43  ;;  %v750_v51 = vadd.f32 %v1750_v40, %v742_v45  ;;  %v762_v55 = vstv %s2419_s23  ;;  %v604_v56 = vmul.f32 %v603_v46, %v2370_v57  ;;  %s2137_s23 = smov 80  }
  0xf9   : > { %596 = vrot.lane.b32.xlu0 %v594_v24, %s3020_s15  ;;  %734 = vrot.lane.b32.xlu1 %v732_v25, %s2135_s6  ;;  %v1018_v58 = vmul.f32 %v1017_v48, %v2370_v57  ;;  %v897_v59 = vstv %s2414_s11  ;;  %v1773_v60 = vrot.slane %v901_v49, 9  ;;  %v1311_v61 = vstv %s2425_s24  ;;  %s2473_s11 = sld [smem:[#allocation5 + $0x4f]] }
  0xfa   : > { %v1195_v62 = vmul.f32 %v1194_v50, %v2370_v57  ;;  %v612_v63 = vadd.f32 %v1730_v52, %v604_v56  ;;  %v1837_v1 = vrot.slane %v1315_v54, 9  ;;  %v763_v2 = vmul.f32 %v762_v55, %v2370_v57  ;;  %s2479_s24 = sld [smem:[#allocation5 + $0x14]] }
  0xfb   : > { %v1026_v0 = vadd.f32 %v1794_v53, %v1018_v58  ;;  %v898_v3 = vmul.f32 %v897_v59, %v2370_v57  ;;  %v624_v5 = vstv %s2433_s25  ;;  %v1038_v6 = vstv %s2437_s26  ;;  %s2483_s25 = sld [smem:[#allocation5 + $0x21]] }
  0xfc   : > { %v1312_v7 = vmul.f32 %v1311_v61, %v2370_v57  ;;  %v1191_v8 = vstv %s2429_s5  ;;  %v1820_v10 = vrot.slane %v1195_v62, 9  ;;  %v759_v11 = vstv %s2443_s10  ;;  %s2487_s26 = sld [smem:[#allocation5 + $0x55]] }
  0xfd   : > { %890 = vrot.lane.b32.xlu0 %v888_v34, %s2135_s6  ;;  %1166 = vrot.lane.b32.xlu1 %v1164_v39, %s2135_s6  ;;  %v906_v9 = vadd.f32 %v1773_v60, %v898_v3  ;;  %v918_v12 = vstv %s2448_s30  ;;  %v1753_v14 = vrot.slane %v763_v2, 9  ;;  %v625_v15 = vmul.f32 %v624_v5, %v2370_v57  ;;  %s2491_s5 = sld [smem:[#allocation5 + $0x51]] }
  0xfe   : > { %v1320_v13 = vadd.f32 %v1837_v1, %v1312_v7  ;;  %v1039_v16 = vmul.f32 %v1038_v6, %v2370_v57  ;;  %v1192_v17 = vmul.f32 %v1191_v8, %v2370_v57  ;;  %v1332_v18 = vstv %s2454_s29  ;;  %s2497_s10 = sld [smem:[#allocation5 + $0x1e]] }
  0xff   : > { %v760_v20 = vmul.f32 %v759_v11, %v2370_v57  ;;  %v621_v21 = vstv %s2451_s8  ;;  %v1035_v23 = vstv %s2461_s16  ;;  %v919_v24 = vmul.f32 %v918_v12, %v2370_v57  ;;  %s2502_s30 = sld [smem:[#allocation5 + $0x50]] }
 0x100   : > { %v1200_v22 = vadd.f32 %v1820_v10, %v1192_v17  ;;  %v1212_v25 = vstv %s2465_s9  ;;  %v1733_v27 = vrot.slane %v625_v15, 9  ;;  %v1797_v28 = vrot.slane %v1039_v16, 9  ;;  %s2505_s29 = sld [smem:[#allocation5 + $0x24]] }
 0x101   : > { %1184 = vrot.lane.b32.xlu0 %v1182_v47, %s3020_s15  ;;  %752 = vrot.lane.b32.xlu1 %v750_v51, %s3020_s15  ;;  %v768_v26 = vadd.f32 %v1753_v14, %v760_v20  ;;  %v1333_v30 = vmul.f32 %v1332_v18, %v2370_v57  ;;  %v780_v31 = vstv %s2473_s11  ;;  %s2508_s8 = sld [smem:[#allocation5 + $0x4c]]  ;;  %v622_v32 = vmul.f32 %v621_v21, %v2370_v57 }
 0x102   : > { %v1036_v33 = vmul.f32 %v1035_v23, %v2370_v57  ;;  %v915_v34 = vstv %s2468_s1  ;;  %s2515_s16 = sld [smem:[#allocation5 + $0x20]]  ;;  %v1776_v35 = vrot.slane %v919_v24, 9  ;;  %v1329_v36 = vstv %s2479_s24  ;;  %s2138_s24 = smov 64  }
 0x103   : > { %v1213_v37 = vmul.f32 %v1212_v25, %v2370_v57  ;;  %s2519_s9 = sld [smem:[#allocation5 + $0x59]]  ;;  %v630_v39 = vadd.f32 %v1733_v27, %v622_v32  ;;  %v1840_v41 = vrot.slane %v1333_v30, 9  ;;  %v781_v42 = vmul.f32 %v780_v31, %v2370_v57 }
 0x104   : > { %v1044_v40 = vadd.f32 %v1797_v28, %v1036_v33  ;;  %s2522_s11 = sld [smem:[#allocation5 + $0x1f]]  ;;  %v916_v43 = vmul.f32 %v915_v34, %v2370_v57  ;;  %v642_v44 = vstv %s2487_s26  ;;  %v1056_v45 = vstv %s2491_s5 }
 0x105   : > { %614 = vrot.lane.b32.xlu0 %v612_v63, %s2137_s23  ;;  %1028 = vrot.lane.b32.xlu1 %v1026_v0, %s3020_s15  ;;  %s2527_s1 = sld [smem:[#allocation5 + $0x56]]  ;;  %v1330_v46 = vmul.f32 %v1329_v36, %v2370_v57  ;;  %v1209_v47 = vstv %s2483_s25  ;;  %v1823_v49 = vrot.slane %v1213_v37, 9  ;;  %v777_v50 = vstv %s2497_s10 }
 0x106   : > { %v924_v48 = vadd.f32 %v1776_v35, %v916_v43  ;;  %v936_v51 = vstv %s2502_s30  ;;  %s2537_s26 = sld [smem:[#allocation5 + $0x28]]  ;;  %v1756_v53 = vrot.slane %v781_v42, 9  ;;  %v643_v54 = vmul.f32 %v642_v44, %v2370_v57 }
 0x107   : > { %v1338_v52 = vadd.f32 %v1840_v41, %v1330_v46  ;;  %v1057_v55 = vmul.f32 %v1056_v45, %v2370_v57  ;;  %s2541_s5 = sld [smem:[#allocation5 + $0x5c]]  ;;  %v1210_v56 = vmul.f32 %v1209_v47, %v2370_v57  ;;  %v1350_v58 = vstv %s2508_s8 }
 0x108   : > { %s2545_s25 = sld [smem:[#allocation5 + $0x58]]  ;;  %v778_v59 = vmul.f32 %v777_v50, %v2370_v57  ;;  %v639_v60 = vstv %s2505_s29  ;;  %v1053_v62 = vstv %s2515_s16  ;;  %v937_v63 = vmul.f32 %v936_v51, %v2370_v57 }
 0x109   : > { %908 = vrot.lane.b32.xlu0 %v906_v9, %s3020_s15  ;;  %1322 = vrot.lane.b32.xlu1 %v1320_v13, %s2135_s6  ;;  %s2551_s10 = sld [smem:[#allocation5 + $0x25]]  ;;  %v1218_v61 = vadd.f32 %v1823_v49, %v1210_v56  ;;  %v1230_v0 = vstv %s2519_s9  ;;  %v1736_v2 = vrot.slane %v643_v54, 9  ;;  %v1800_v3 = vrot.slane %v1057_v55, 9 }
 0x10a   : > { %s2556_s30 = sld [smem:[#allocation5 + $0x57]]  ;;  %v786_v1 = vadd.f32 %v1756_v53, %v778_v59  ;;  %v1351_v5 = vmul.f32 %v1350_v58, %v2370_v57  ;;  %v640_v7 = vmul.f32 %v639_v60, %v2370_v57  ;;  %v1054_v8 = vmul.f32 %v1053_v62, %v2370_v57 }
 0x10b   : > { %s2559_s8 = sld [smem:[#allocation5 + $0x2b]]  ;;  %v798_v6 = vstv %s2527_s1  ;;  %v933_v9 = vstv %s2522_s11  ;;  %v1779_v10 = vrot.slane %v937_v63, 9  ;;  %v1347_v11 = vstv %s2533_s28  ;;  %s2139_s28 = smov 48  }
 0x10c   : > { %s2562_s29 = sld [smem:[#allocation5 + $0x53]]  ;;  %v1231_v12 = vmul.f32 %v1230_v0, %v2370_v57  ;;  %v648_v13 = vadd.f32 %v1736_v2, %v640_v7  ;;  %v1062_v14 = vadd.f32 %v1800_v3, %v1054_v8  ;;  %v1843_v15 = vrot.slane %v1351_v5, 9 }
 0x10d   : > { %1202 = vrot.lane.b32.xlu0 %v1200_v22, %s2137_s23  ;;  %770 = vrot.lane.b32.xlu1 %v768_v26, %s2137_s23  ;;  %s2569_s16 = sld [smem:[#allocation5 + $0x27]]  ;;  %v799_v16 = vmul.f32 %v798_v6, %v2370_v57  ;;  %v934_v17 = vmul.f32 %v933_v9, %v2370_v57  ;;  %v660_v18 = vstv %s2541_s5  ;;  %v1348_v21 = vmul.f32 %v1347_v11, %v2370_v57 }
 0x10e   : > { %s2573_s9 = sld [smem:[#allocation5 + $0x60]]  ;;  %v1074_v20 = vstv %s2545_s25  ;;  %v1227_v22 = vstv %s2537_s26  ;;  %v1826_v24 = vrot.slane %v1231_v12, 9  ;;  %v661_v30 = vmul.f32 %v660_v18, %v2370_v57 }
 0x10f   : > { %s2576_s1 = sld [smem:[#allocation5 + $0x26]]  ;;  %v942_v23 = vadd.f32 %v1779_v10, %v934_v17  ;;  %v795_v25 = vstv %s2551_s10  ;;  %v1356_v27 = vadd.f32 %v1843_v15, %v1348_v21  ;;  %v1759_v28 = vrot.slane %v799_v16, 9 }
 0x110   : > { %s2581_s11 = sld [smem:[#allocation5 + $0x5d]]  ;;  %v954_v26 = vstv %s2556_s30  ;;  %v1075_v31 = vmul.f32 %v1074_v20, %v2370_v57  ;;  %v1228_v32 = vmul.f32 %v1227_v22, %v2370_v57  ;;  %v796_v34 = vmul.f32 %v795_v25, %v2370_v57 }
 0x111   : > { %632 = vrot.lane.b32.xlu0 %v630_v39, %s2138_s24  ;;  %1046 = vrot.lane.b32.xlu1 %v1044_v40, %s2137_s23  ;;  %s2591_s5 = sld [smem:[#allocation5 + $0x2f]]  ;;  %v657_v35 = vstv %s2559_s8  ;;  %v955_v39 = vmul.f32 %v954_v26, %v2370_v57  ;;  %v1739_v42 = vrot.slane %v661_v30, 9 }
 0x112   : > { %s2595_s25 = sld [smem:[#allocation5 + $0x5e]]  ;;  %v1368_v33 = vstv %s2562_s29  ;;  %v1236_v36 = vadd.f32 %v1826_v24, %v1228_v32  ;;  %v804_v41 = vadd.f32 %v1759_v28, %v796_v34  ;;  %v1803_v43 = vrot.slane %v1075_v31, 9 }
 0x113   : > { %s2599_s26 = sld [smem:[#allocation5 + $0x5f]]  ;;  %v1071_v37 = vstv %s2569_s16  ;;  %v1369_v44 = vmul.f32 %v1368_v33, %v2370_v57  ;;  %v658_v46 = vmul.f32 %v657_v35, %v2370_v57  ;;  %v1782_v49 = vrot.slane %v955_v39, 9 }
 0x114   : > { %s2605_s10 = sld [smem:[#allocation5 + $0x2c]]  ;;  %v1248_v40 = vstv %s2573_s9  ;;  %v1072_v47 = vmul.f32 %v1071_v37, %v2370_v57 }
 0x115   : > { %926 = vrot.lane.b32.xlu0 %v924_v48, %s2137_s23  ;;  %1340 = vrot.lane.b32.xlu1 %v1338_v52, %s3020_s15  ;;  %s2587_s15 = sld [smem:[#allocation5 + $0x22]]  ;;  %v951_v48 = vstv %s2576_s1  ;;  %v1249_v51 = vmul.f32 %v1248_v40, %v2370_v57  ;;  %v666_v52 = vadd.f32 %v1739_v42, %v658_v46  ;;  %v1846_v54 = vrot.slane %v1369_v44, 9 }
 0x116   : > { %s2610_s30 = sld [smem:[#allocation5 + $0x5a]]  ;;  %v816_v45 = vstv %s2581_s11  ;;  %v1080_v53 = vadd.f32 %v1803_v43, %v1072_v47  ;;  %v952_v56 = vmul.f32 %v951_v48, %v2370_v57  ;;  %s2140_s11 = smov 32  }
 0x117   : > { %s2613_s29 = sld [smem:[#allocation5 + $0x2d]]  ;;  %v817_v55 = vmul.f32 %v816_v45, %v2370_v57  ;;  %v1829_v63 = vrot.slane %v1249_v51, 9 }
 0x118   : > { %s2616_s8 = sld [smem:[#allocation5 + $0x38]]  ;;  %v972_v58 = vstv %s2595_s25  ;;  %v960_v62 = vadd.f32 %v1782_v49, %v952_v56 }
 0x119   : > { %1220 = vrot.lane.b32.xlu0 %v1218_v61, %s2138_s24  ;;  %788 = vrot.lane.b32.xlu1 %v786_v1, %s2138_s24  ;;  %s2623_s16 = sld [smem:[#allocation5 + $0x2e]]  ;;  %v1092_v59 = vstv %s2599_s26  ;;  %v1245_v61 = vstv %s2591_s5  ;;  %v1762_v3 = vrot.slane %v817_v55, 9  ;;  %v973_v5 = vmul.f32 %v972_v58, %v2370_v57 }
 0x11a   : > { %s2627_s9 = sld [smem:[#allocation5 + $0x61]]  ;;  %v813_v0 = vstv %s2605_s10  ;;  %v1093_v6 = vmul.f32 %v1092_v59, %v2370_v57  ;;  %v1246_v7 = vmul.f32 %v1245_v61, %v2370_v57 }
 0x11b   : > { %v1365_v50 = vstv %s2587_s15  ;;  %s2633_s1 = sld [smem:[#allocation5 + $0x46]]  ;;  %v814_v9 = vmul.f32 %v813_v0, %v2370_v57  ;;  %v1785_v16 = vrot.slane %v973_v5, 9 }
 0x11c   : > { %v1366_v60 = vmul.f32 %v1365_v50, %v2370_v57  ;;  %s2639_s15 = sld [smem:[#allocation5 + $0x29]]  ;;  %v1386_v1 = vstv %s2610_s30  ;;  %v1254_v11 = vadd.f32 %v1829_v63, %v1246_v7  ;;  %v1806_v17 = vrot.slane %v1093_v6, 9 }
 0x11d   : > { %650 = vrot.lane.b32.xlu0 %v648_v13, %s2139_s28  ;;  %1064 = vrot.lane.b32.xlu1 %v1062_v14, %s2138_s24  ;;  %s2643_s25 = sld [smem:[#allocation5 + $0x7]]  ;;  %v969_v10 = vstv %s2613_s29  ;;  %v1387_v13 = vmul.f32 %v1386_v1, %v2370_v57  ;;  %v822_v15 = vadd.f32 %v1762_v3, %v814_v9 }
 0x11e   : > { %v1374_v2 = vadd.f32 %v1846_v54, %v1366_v60  ;;  %s2647_s26 = sld [smem:[#allocation5 + $0x3f]]  ;;  %v421_v8 = vstv %s2616_s8  ;;  %v970_v21 = vmul.f32 %v969_v10, %v2370_v57 }
 0x11f   : > { %s2651_s5 = sld [smem:[#allocation5 + $0x54]]  ;;  %v1089_v12 = vstv %s2623_s16  ;;  %v422_v18 = vmul.f32 %v421_v8, %v2370_v57  ;;  %v1849_v24 = vrot.slane %v1387_v13, 9 }
 0x120   : > { %s2657_s10 = sld [smem:[#allocation5 + $0x30]]  ;;  %v1404_v14 = vstv %s2627_s9  ;;  %v1090_v22 = vmul.f32 %v1089_v12, %v2370_v57 }
 0x121   : > { %944 = vrot.lane.b32.xlu0 %v942_v23, %s2138_s24  ;;  %1358 = vrot.lane.b32.xlu1 %v1356_v27, %s2137_s23  ;;  %s2662_s30 = sld [smem:[#allocation5 + $0x15]]  ;;  %v459_v20 = vstv %s2633_s1  ;;  %v1405_v26 = vmul.f32 %v1404_v14, %v2370_v57  ;;  %v978_v27 = vadd.f32 %v1785_v16, %v970_v21  ;;  %v1701_v30 = vrot.slane %v422_v18, 9 }
 0x122   : > { %s2666_s8 = sld [smem:[#allocation5 + $0x4d]]  ;;  %v1383_v23 = vstv %s2639_s15  ;;  %v1098_v28 = vadd.f32 %v1806_v17, %v1090_v22  ;;  %v460_v31 = vmul.f32 %v459_v20, %v2370_v57 }
 0x123   : > { %s2673_s29 = sld [smem:[#allocation5 + $0xe]]  ;;  %v418_v25 = vstv %s2643_s25  ;;  %v1384_v32 = vmul.f32 %v1383_v23, %v2370_v57  ;;  %v1852_v39 = vrot.slane %v1405_v26, 9 }
 0x124   : > { %s2677_s16 = sld [smem:[#allocation5 + $0x23]]  ;;  %v440_v33 = vstv %s2647_s26  ;;  %v419_v35 = vmul.f32 %v418_v25, %v2370_v57  ;;  %v1707_v42 = vrot.slane %v460_v31, 9 }
 0x125   : > { %1238 = vrot.lane.b32.xlu0 %v1236_v36, %s2139_s28  ;;  %806 = vrot.lane.b32.xlu1 %v804_v41, %s2139_s28  ;;  %v497_v34 = vstv %s2651_s5  ;;  %s2683_s9 = sld [smem:[#allocation5 + $0x5b]]  ;;  %v1392_v37 = vadd.f32 %v1849_v24, %v1384_v32  ;;  %v441_v43 = vmul.f32 %v440_v33, %v2370_v57 }
 0x126   : > { %v1401_v36 = vstv %s2657_s10  ;;  %s2690_s1 = sld [smem:[#allocation5 + $0x1c]]  ;;  %v427_v41 = vadd.f32 %v1701_v30, %v419_v35  ;;  %v498_v44 = vmul.f32 %v497_v34, %v2370_v57 }
 0x127   : > { %v456_v40 = vstv %s2662_s30  ;;  %v1402_v45 = vmul.f32 %v1401_v36, %v2370_v57  ;;  %s1714_s15 = sld [smem:[#allocation5 + $0x2a]] }
 0x128   : > { %v478_v46 = vstv %s2666_s8  ;;  %v457_v47 = vmul.f32 %v456_v40, %v2370_v57  ;;  %s1765_s25 = sld [smem:[#allocation5 + $0x3]] }
 0x129   : > { %668 = vrot.lane.b32.xlu0 %v666_v52, %s2140_s11  ;;  %1082 = vrot.lane.b32.xlu1 %v1080_v53, %s2139_s28  ;;  %v1410_v48 = vadd.f32 %v1852_v39, %v1402_v45  ;;  %v437_v49 = vstv %s2673_s29  ;;  %v1704_v52 = vrot.slane %v441_v43, 9  ;;  %v1713_v53 = vrot.slane %v498_v44, 9  ;;  %s1719_s26 = sld [smem:[#allocation5 + $0x1]] }
 0x12a   : > { %v494_v50 = vstv %s2677_s16  ;;  %v465_v51 = vadd.f32 %v1707_v42, %v457_v47  ;;  %v479_v54 = vmul.f32 %v478_v46, %v2370_v57  ;;  %v438_v56 = vmul.f32 %v437_v49, %v2370_v57  ;;  %s2748_s5 = sld [smem:[#allocation5 + $0x2]] }
 0x12b   : > { %v516_v55 = vstv %s2683_s9  ;;  %v495_v58 = vmul.f32 %v494_v50, %v2370_v57  ;;  %s1743_s10 = sld [smem:[#allocation5 + $0x33]] }
 0x12c   : > { %v475_v59 = vstv %s2690_s1  ;;  %v446_v60 = vadd.f32 %v1704_v52, %v438_v56  ;;  %v517_v63 = vmul.f32 %v516_v55, %v2370_v57  ;;  %s2750_s30 = sld [smem:[#allocation5 + $0x5]]  ;;  %s2141_s1 = smov 127  }
 0x12d   : > { %962 = vrot.lane.b32.xlu0 %v960_v62, %s2139_s28  ;;  %1376 = vrot.lane.b32.xlu1 %v1374_v2, %s2138_s24  ;;  %v503_v61 = vadd.f32 %v1713_v53, %v495_v58  ;;  %v1710_v62 = vrot.slane %v479_v54, 9  ;;  %v476_v0 = vmul.f32 %v475_v59, %v2370_v57  ;;  %v513_v1 = vstv %s1714_s15  ;;  %s1810_s8 = sld [smem:[#allocation5 + $0x36]] }
 0x12e   : > { %v1716_v3 = vrot.slane %v517_v63, 9  ;;  %v514_v5 = vmul.f32 %v513_v1, %v2370_v57  ;;  %v867_v13 = vstv %s1765_s25  ;;  %s2756_s29 = sld [smem:[#allocation5 + $0x6]]  ;;  %s2144_s25 = smov 123  }
 0x12f   : > { %v484_v2 = vadd.f32 %v1710_v62, %v476_v0  ;;  %s2758_s16 = sld [smem:[#allocation5 + $0x37]]  ;;  %v555_v42 = vstv %s1719_s26  ;;  %s3037_s26 = scalar_lea.vmem [#allocation9], %s2311_s0 }
 0x130   : > { %v522_v6 = vadd.f32 %v1716_v3, %v514_v5  ;;  %s2765_s9 = sld [smem:[#allocation5 + $0x31]]  ;;  %v556_v53 = vmul.f32 %v555_v42, %v2370_v57 }
 0x131   : > { %1256 = vrot.lane.b32.xlu0 %v1254_v11, %s2140_s11  ;;  %824 = vrot.lane.b32.xlu1 %v822_v15, %s2140_s11  ;;  %v868_v15 = vmul.f32 %v867_v13, %v2370_v57  ;;  %v714_v44 = vstv %s1743_s10  ;;  %s2853_s15 = sld [smem:[#allocation5]]  ;;  %s284_s10 = scalar_lea.vmem [#allocation12], %s2311_s0 }
 0x132   : > { %v715_v54 = vmul.f32 %v714_v44, %v2370_v57  ;;  %v1143_v55 = vstv %s2750_s30  ;;  %s1562_s30 = sshll.u32 %s284_s10, 4  ;;  %s1563_s30 = int_to_ptr.vmem [resolvable:$true] %s1562_s30 }
 0x133   : > { %v1146_v52 = vstv %s1810_s8 }
 0x134   : > { %v1299_v59 = vstv %s2756_s29  ;;  %v1147_v62 = vmul.f32 %v1146_v52, %v2370_v57 }
 0x135   : > { %980 = vrot.lane.b32.xlu0 %v978_v27, %s2140_s11  ;;  %1100 = vrot.lane.b32.xlu1 %v1098_v28, %s2140_s11  ;;  %v2800_v42 = vmul.f32 %v1299_v59, %v2370_v57 }
 0x136   : > { %v409_v1 = vstv %s2765_s9  ;;  %s1546_s9 = scalar_lea.sflag [#allocation7], %s2308_s13 }
 0x139   : > { %1394 = vrot.lane.b32.xlu1 %v1392_v37, %s2139_s28  ;;  %429 = vrot.lane.b32.xlu0 %v427_v41, %s2135_s6  ;;  %s3036_s6 = smov 96  }
 0x13d   : > { %1412 = vrot.lane.b32.xlu1 %v1410_v48, %s2140_s11  ;;  %467 = vrot.lane.b32.xlu0 %v465_v51, %s2137_s23  ;;  %s1766_s23 = sld [smem:[#allocation5 + $0x34]]  ;;  %v711_v51 = vstv %s2748_s5  ;;  %s1864_s5 = sshll.u32 %s2119_s20, 7 }
 0x13e   : > { %v712_v13 = vmul.f32 %v711_v51, %v2370_v57 }
 0x141   : > { %448 = vrot.lane.b32.xlu1 %v446_v60, %s3036_s6  ;;  %505 = vrot.lane.b32.xlu0 %v503_v61, %s2139_s28  ;;  %s2742_s28 = sld [smem:[#allocation5 + $0x4]]  ;;  %v1302_v60 = vstv %s2758_s16  ;;  %s2142_s6 = smov 126  }
 0x142   : > { %s1560_s16 = scalar_lea.hbm %s3018_s4, %s1864_s5 }
 0x143   : > { %v870_v7 = vstv %s1766_s23  ;;  %s2143_s23 = smov 124  }
 0x144   : > { %v871_v10 = vmul.f32 %v870_v7, %v2370_v57 }
 0x145   : > { %486 = vrot.lane.b32.xlu1 %v484_v2, %s2138_s24  ;;  %s1720_s24 = sld [smem:[#allocation5 + $0x32]] }
 0x146   : > { %v1767_v14 = vrot.slane %v871_v10, 9  ;;  %v2790_v10 = vmul.f32 %v1302_v60, %v2370_v57 }
 0x147   : > { %v987_v45 = vstv %s2742_s28  ;;  %s2146_s28 = smov 125  }
 0x148   : > { %v876_v20 = vadd.f32 %v1767_v14, %v868_v15  ;;  %v988_v2 = vmul.f32 %v987_v45, %v2370_v57 }
 0x149   : > { %524 = vrot.lane.b32.xlu1 %v522_v6, %s2140_s11  ;;  %s1787_s11 = sld [smem:[#allocation5 + $0x35]] }
 0x14b   : > { %v558_v36 = vstv %s1720_s24  ;;  %s2145_s24 = smov 122  }
 0x14c   : > { %v559_v37 = vmul.f32 %v558_v36, %v2370_v57 }
 0x14e   : > { %v1721_v46 = vrot.slane %v559_v37, 9 }
 0x14f   : > { %v990_v41 = vstv %s1787_s11  ;;  %s2949_s11 = sld [smem:[#allocation4]] }
 0x150   : > { %v991_v49 = vmul.f32 %v990_v41, %v2370_v57  ;;  %v564_v61 = vadd.f32 %v1721_v46, %v556_v53  ;;  %v1834_v46 = vrot.slane %v2790_v10, 9 }
 0x152   : > { %v1788_v3 = vrot.slane %v991_v49, 9 }
 0x154   : > { %v996_v37 = vadd.f32 %v1788_v3, %v988_v2  ;;  %v2821_v2 = vsub.s32 0, %v2327_v29 }
 0x167   : > { %v2715_v8 = vpop.permute.xlu0 %1010  ;;  %v579_v9 = vpop.permute.xlu1 %578 }
 0x168   : > { %v580_v43 = vrot.slane %v579_v9, 2 }
 0x16a   : > { %v581_v56 = vsel %vm432_vm5, %v579_v9, %v580_v43  ;;  %v1744_v9 = vrot.slane %v715_v54, 9 }
 0x16b   : > { %v2718_v11 = vpop.permute.xlu0 %596  ;;  %v2720_v12 = vpop.permute.xlu1 %734  ;;  %v583_v7 = vadd.f32 %v581_v56, %v564_v61  ;;  %v2812_v56 = vsub.s32 2, %v2327_v29 }
 0x16c   : > { %v598_v50 = vrot.slane %v2718_v11, 2  ;;  %v736_v14 = vrot.slane %v2720_v12, 2  ;;  %v720_v44 = vadd.f32 %v1744_v9, %v712_v13 }
 0x16e   : > { %v599_v5 = vsel %vm451_vm6, %v2718_v11, %v598_v50  ;;  %v737_v49 = vsel %vm432_vm5, %v2720_v12, %v736_v14  ;;  %v2834_v14 = vsub.s32 4, %v2327_v29 }
 0x16f   : > { %v891_v16 = vpop.permute.xlu0 %890  ;;  %v2723_v17 = vpop.permute.xlu1 %1166  ;;  %v739_v61 = vadd.f32 %v737_v49, %v720_v44 }
 0x170   : > { %v892_v18 = vrot.slane %v891_v16, 2  ;;  %v1168_v53 = vrot.slane %v2723_v17, 2 }
 0x172   : > { %v893_v21 = vsel %vm432_vm5, %v891_v16, %v892_v18  ;;  %v601_v18 = vadd.f32 %v599_v5, %v583_v7  ;;  %v1169_v7 = vsel %vm432_vm5, %v2723_v17, %v1168_v53 }
 0x173   : > { %v2726_v22 = vadd.f32 %v893_v21, %v876_v20  ;;  %v2728_v23 = vpop.permute.xlu0 %1184  ;;  %v2730_v24 = vpop.permute.xlu1 %752  ;;  %v1144_v20 = vmul.f32 %v1143_v55, %v2370_v57  ;;  %v1811_v21 = vrot.slane %v1147_v62, 9 }
 0x174   : > { %v754_v41 = vrot.slane %v2730_v24, 2 }
 0x175   : > { %v1152_v52 = vadd.f32 %v1811_v21, %v1144_v20 }
 0x177   : > { %v615_v25 = vpop.permute.xlu0 %614  ;;  %v2732_v26 = vpop.permute.xlu1 %1028 }
 0x178   : > { %v616_v58 = vrot.slane %v615_v25, 2  ;;  %v1030_v59 = vrot.slane %v2732_v26, 2 }
 0x17a   : > { %v617_v15 = vsel %vm470_vm7, %v615_v25, %v616_v58  ;;  %v1012_v25 = vrot.slane %v2715_v8, 2  ;;  %v755_v58 = vsel %vm451_vm6, %v2730_v24, %v754_v41 }
 0x17b   : > { %v2734_v27 = vpop.permute.xlu0 %908  ;;  %v2736_v28 = vpop.permute.xlu1 %1322  ;;  %v619_v45 = vadd.f32 %v617_v15, %v601_v18  ;;  %v757_v9 = vadd.f32 %v755_v58, %v739_v61  ;;  %v1031_v15 = vsel %vm451_vm6, %v2732_v26, %v1030_v59  ;;  %v2850_v26 = vmul.f32 %v409_v1, %v2370_v57 }
 0x17c   : > { %v1324_v49 = vrot.slane %v2736_v28, 2  ;;  %v1308_v58 = vadd.f32 %v1834_v46, %v2800_v42 }
 0x17f   : > { %v2738_v30 = vpop.permute.xlu0 %1202  ;;  %v2740_v31 = vpop.permute.xlu1 %770 }
 0x180   : > { %v772_v50 = vrot.slane %v2740_v31, 2 }
 0x182   : > { %v773_v3 = vsel %vm470_vm7, %v2740_v31, %v772_v50  ;;  %v1186_v31 = vrot.slane %v2728_v23, 2 }
 0x183   : > { %v2744_v32 = vpop.permute.xlu0 %632  ;;  %v2746_v33 = vpop.permute.xlu1 %1046  ;;  %v775_v20 = vadd.f32 %v773_v3, %v757_v9 }
 0x184   : > { %v634_v6 = vrot.slane %v2744_v32, 2  ;;  %v1048_v5 = vrot.slane %v2746_v33, 2 }
 0x186   : > { %v635_v43 = vsel %vm489_vm8, %v2744_v32, %v634_v6 }
 0x187   : > { %v2752_v34 = vpop.permute.xlu0 %926  ;;  %v2754_v35 = vpop.permute.xlu1 %1340  ;;  %v637_v54 = vadd.f32 %v635_v43, %v619_v45  ;;  %v1049_v43 = vsel %vm470_vm7, %v2746_v33, %v1048_v5  ;;  %v1171_v45 = vadd.f32 %v1169_v7, %v1152_v52  ;;  %v1187_v33 = vsel %vm451_vm6, %v2728_v23, %v1186_v31 }
 0x188   : > { %v1342_v53 = vrot.slane %v2754_v35, 2 }
 0x18b   : > { %v2761_v39 = vpop.permute.xlu0 %1220  ;;  %v2763_v40 = vpop.permute.xlu1 %788 }
 0x18c   : > { %v790_v12 = vrot.slane %v2763_v40, 2  ;;  %v1222_v59 = vrot.slane %v2761_v39, 2 }
 0x18e   : > { %v1223_v9 = vsel %vm489_vm8, %v2761_v39, %v1222_v59 }
 0x18f   : > { %v651_v47 = vpop.permute.xlu0 %650  ;;  %v2768_v48 = vpop.permute.xlu1 %1064 }
 0x190   : > { %v652_v16 = vrot.slane %v651_v47, 2  ;;  %v1066_v17 = vrot.slane %v2768_v48, 2 }
 0x192   : > { %v653_v51 = vsel %vm508_vm9, %v651_v47, %v652_v16  ;;  %v1013_v47 = vsel %vm432_vm5, %v2715_v8, %v1012_v25  ;;  %v791_v16 = vsel %vm489_vm8, %v2763_v40, %v790_v12  ;;  %v1067_v57 = vsel %vm489_vm8, %v2768_v48, %v1066_v17 }
 0x193   : > { %v2780_v63 = vpop.permute.xlu0 %944  ;;  %v2782_v0 = vpop.permute.xlu1 %1358  ;;  %v655_v62 = vadd.f32 %v653_v51, %v637_v54  ;;  %v1015_v18 = vadd.f32 %v1013_v47, %v996_v37  ;;  %v793_v37 = vadd.f32 %v791_v16, %v775_v20  ;;  %v1325_v47 = vsel %vm432_vm5, %v2736_v28, %v1324_v49 }
 0x194   : > { %v1360_v42 = vrot.slane %v2782_v0, 2 }
 0x195   : > { %v1033_v40 = vadd.f32 %v1031_v15, %v1015_v18  ;;  %v1327_v15 = vadd.f32 %v1325_v47, %v1308_v58 }
 0x197   : > { %v2796_v11 = vpop.permute.xlu0 %1238  ;;  %v807_v36 = vpop.permute.xlu1 %806  ;;  %v1051_v52 = vadd.f32 %v1049_v43, %v1033_v40 }
 0x198   : > { %v808_v6 = vrot.slane %v807_v36, 2  ;;  %v1240_v46 = vrot.slane %v2796_v11, 2 }
 0x199   : > { %v1069_v48 = vadd.f32 %v1067_v57, %v1051_v52  ;;  %v1967_v57 = vld [vmem:[#allocation3] sm:$0x3f] }
 0x19a   : > { %v809_v25 = vsel %vm508_vm9, %v807_v36, %v808_v6  ;;  %v1204_v36 = vrot.slane %v2738_v30, 2  ;;  %v1343_v6 = vsel %vm451_vm6, %v2754_v35, %v1342_v53  ;;  %v406_v35 = vstv %s2853_s15  ;;  %s2147_s15 = smov [#allocation12]  }
 0x19b   : > { %v669_v55 = vpop.permute.xlu0 %668  ;;  %v1083_v32 = vpop.permute.xlu1 %1082  ;;  %v811_v54 = vadd.f32 %v809_v25, %v793_v37  ;;  %v1241_v39 = vsel %vm508_vm9, %v2796_v11, %v1240_v46  ;;  %v1345_v25 = vadd.f32 %v1343_v6, %v1327_v15 }
 0x19c   : > { %v670_v60 = vrot.slane %v669_v55, 2  ;;  %v1084_v44 = vrot.slane %v1083_v32, 2  ;;  %v1205_v5 = vsel %vm470_vm7, %v2738_v30, %v1204_v36 }
 0x19e   : > { %v671_v24 = vsel %vm527_vm10, %v669_v55, %v670_v60  ;;  %v1085_v12 = vsel %vm508_vm9, %v1083_v32, %v1084_v44  ;;  %v1189_v60 = vadd.f32 %v1187_v33, %v1171_v45 }
 0x19f   : > { %v673_v10 = vadd.f32 %v671_v24, %v655_v62  ;;  %v2829_v8 = vpop.permute.xlu0 %962  ;;  %v2831_v13 = vpop.permute.xlu1 %1376  ;;  %v1087_v24 = vadd.f32 %v1085_v12, %v1069_v48 }
 0x1a0   : > { %v1207_v16 = vadd.f32 %v1205_v5, %v1189_v60  ;;  %v964_v5 = vrot.slane %v2829_v8, 2 }
 0x1a1   : > { %v692_v21 = vrot.slane %v673_v10, %v2812_v56  ;;  %v688_v41 = vrot.slane %v673_v10, %v2821_v2  ;;  %v696_v55 = vrot.slane %v673_v10, %v2834_v14  ;;  %v1378_v10 = vrot.slane %v2831_v13, 2 }
 0x1a2   : > { %v1225_v44 = vadd.f32 %v1223_v9, %v1207_v16  ;;  %v965_v15 = vsel %vm508_vm9, %v2829_v8, %v964_v5 }
 0x1a3   : > { %v1257_v50 = vpop.permute.xlu0 %1256  ;;  %v825_v51 = vpop.permute.xlu1 %824  ;;  %699 = vrot.lane.b32.xlu1 %v692_v21, %s2141_s1  ;;  %697 = vrot.lane.b32.xlu0 %v688_v41, %s2141_s1  ;;  %v910_v21 = vrot.slane %v2734_v27, 2  ;;  %v1361_v41 = vsel %vm470_vm7, %v2782_v0, %v1360_v42  ;;  %v1379_v49 = vsel %vm489_vm8, %v2831_v13, %v1378_v10  ;;  %v407_v0 = vmul.f32 %v1967_v57, %v406_v35 }
 0x1a4   : > { %v826_v1 = vrot.slane %v825_v51, 2  ;;  %v1258_v30 = vrot.slane %v1257_v50, 2  ;;  %v1363_v33 = vadd.f32 %v1361_v41, %v1345_v25  ;;  %v1243_v36 = vadd.f32 %v1241_v39, %v1225_v44 }
 0x1a5   : > { %v911_v53 = vsel %vm451_vm6, %v2734_v27, %v910_v21 }
 0x1a6   : > { %v827_v23 = vsel %vm527_vm10, %v825_v51, %v826_v1  ;;  %v1259_v37 = vsel %vm527_vm10, %v1257_v50, %v1258_v30  ;;  %v1698_v1 = vrot.slane %v2850_v26, 9  ;;  %v946_v26 = vrot.slane %v2780_v63, 2 }
 0x1a7   : > { %v829_v61 = vadd.f32 %v827_v23, %v811_v54  ;;  %v2868_v62 = vpop.permute.xlu0 %980  ;;  %v1101_v3 = vpop.permute.xlu1 %1100  ;;  %701 = vrot.lane.b32.xlu0 %v696_v55, %s2141_s1  ;;  %v928_v54 = vrot.slane %v2752_v34, 2  ;;  %v1381_v55 = vadd.f32 %v1379_v49, %v1363_v33  ;;  %v1261_v58 = vadd.f32 %v1259_v37, %v1243_v36  ;;  %s2039_s1 = scalar_lea.vmem %s1563_s30, 128 }
 0x1a8   : > { %v1102_v32 = vrot.slane %v1101_v3, 2  ;;  %v913_v47 = vadd.f32 %v911_v53, %v2726_v22  ;;  %v415_v48 = vadd.f32 %v1698_v1, %v407_v0  ;;  %v947_v22 = vsel %vm489_vm8, %v2780_v63, %v946_v26  ;;  %p2040_p1 = scmp.ne.s32.totalorder %s1563_s30, %s2039_s1 }
 0x1a9   : > { %v844_v28 = vrot.slane %v829_v61, %v2821_v2  ;;  %v848_v7 = vrot.slane %v829_v61, %v2812_v56  ;;  %v852_v45 = vrot.slane %v829_v61, %v2834_v14  ;;  %v982_v9 = vrot.slane %v2868_v62, 2 }
 0x1aa   : > { %v1103_v31 = vsel %vm527_vm10, %v1101_v3, %v1102_v32  ;;  %v929_v3 = vsel %vm470_vm7, %v2752_v34, %v928_v54  ;;  %v1284_v63 = vrot.slane %v1261_v58, %v2834_v14  ;;  %v379_v54 = vand.u32 127, %v331_v19  ;;  %p2041_p8 = pnand %p2040_p1, %p2262_p0 }
 0x1ab   : > { %v1105_v17 = vadd.f32 %v1103_v31, %v1087_v24  ;;  %v1395_v18 = vpop.permute.xlu1 %1394  ;;  %853 = vrot.lane.b32.xlu1 %v844_v28, %s2142_s6  ;;  %855 = vrot.lane.b32.xlu0 %v848_v7, %s2142_s6  ;;  %v430_v20 = vpop.permute.xlu0 %429  ;;  %v1276_v28 = vrot.slane %v1261_v58, %v2821_v2  ;;  %v1280_v7 = vrot.slane %v1261_v58, %v2812_v56 }
 0x1ac   : > { %v1396_v43 = vrot.slane %v1395_v18, 2  ;;  %v431_v51 = vrot.slane %v430_v20, 2  ;;  %v931_v30 = vadd.f32 %v929_v3, %v913_v47  ;;  %v983_v41 = vsel %vm527_vm10, %v2868_v62, %v982_v9  ;;  %p2042_p2 = pneg %p2041_p8 }
 0x1ad   : > { %v1120_v40 = vrot.slane %v1105_v17, %v2821_v2  ;;  %v1124_v59 = vrot.slane %v1105_v17, %v2812_v56  ;;  %v1128_v12 = vrot.slane %v1105_v17, %v2834_v14 }
 0x1ae   : > { %v1397_v13 = vsel %vm508_vm9, %v1395_v18, %v1396_v43  ;;  %v433_v23 = vsel %vm432_vm5, %v430_v20, %v431_v51  ;;  %v949_v35 = vadd.f32 %v947_v22, %v931_v30 }
 0x1af   : > { %v1413_v11 = vpop.permute.xlu1 %1412  ;;  %857 = vrot.lane.b32.xlu1 %v852_v45, %s2142_s6  ;;  %1129 = vrot.lane.b32.xlu0 %v1120_v40, %s2143_s23  ;;  %v468_v52 = vpop.permute.xlu0 %467  ;;  %v1399_v27 = vadd.f32 %v1397_v13, %v1381_v55  ;;  %v435_v32 = vadd.f32 %v433_v23, %v415_v48  ;;  %v380_v55 = vadd.s32 128, %v379_v54  ;;  %s2043_s6 = sshll.u32 %s2147_s15, 4  ;;  %s2044_s6 = int_to_ptr.vmem [resolvable:$false] %s2043_s6 }
 0x1b0   : > { %v1414_v50 = vrot.slane %v1413_v11, 2  ;;  %v469_v42 = vrot.slane %v468_v52, 2  ;;  %v967_v43 = vadd.f32 %v965_v15, %v949_v35  ;;  %s2045_s20 = scalar_lea.vmem %s2044_s6, 256  ;;  %p2046_p6 = scmp.lt.s32.totalorder %s1563_s30, %s2044_s6 }
 0x1b1   : > { %v392_v26 = vand.u32 15, %v380_v55  ;;  %v1491_v55 = vstv %s2949_s11  ;;  %p2047_p4 = scmp.lt.s32.totalorder %s2045_s20, %s2039_s1 }
 0x1b2   : > { %v1415_v60 = vsel %vm527_vm10, %v1413_v11, %v1414_v50  ;;  %v471_v16 = vsel %vm470_vm7, %v468_v52, %v469_v42  ;;  %v985_v40 = vadd.f32 %v983_v41, %v967_v43  ;;  %vm1135_vm7 = vcmask 1014784  }
 0x1b3   : > { %1131 = vrot.lane.b32.xlu1 %v1124_v59, %s2143_s23  ;;  %v449_v61 = vpop.permute.xlu1 %448  ;;  %1133 = vrot.lane.b32.xlu0 %v1128_v12, %s2143_s23  ;;  %v1417_v6 = vadd.f32 %v1415_v60, %v1399_v27  ;;  %v506_v24 = vpop.permute.xlu0 %505  ;;  %v385_v12 = vand.u32 15, %v379_v54  ;;  %vm532_vm13 = vcmp.ge.s32.totalorder %v392_v26, 3  ;;  %vm675_vm14 = vcmp.ge.s32.totalorder %v392_v26, 2  ;;  %p2048_p9 = por %p2047_p4, %p2046_p6 }
 0x1b4   : > { %v450_v46 = vrot.slane %v449_v61, 2  ;;  %v507_v17 = vrot.slane %v506_v24, 2  ;;  %v1460_v57 = vrot.slane %v985_v40, %v2821_v2  ;;  %v1464_v0 = vrot.slane %v985_v40, %v2812_v56 }
 0x1b5   : > { %v1432_v21 = vrot.slane %v1417_v6, %v2821_v2  ;;  %v1436_v37 = vrot.slane %v1417_v6, %v2812_v56  ;;  %v1440_v51 = vrot.slane %v1417_v6, %v2834_v14  ;;  %v1468_v1 = vrot.slane %v985_v40, %v2834_v14  ;;  %p2049_p13 = pnand %p2048_p9, %p2042_p2 }
 0x1b6   : > { %v452_v10 = vsel %vm451_vm6, %v449_v61, %v450_v46  ;;  %v509_v8 = vsel %vm508_vm9, %v506_v24, %v507_v17  ;;  %vm531_vm11 = vcmp.ge.s32.totalorder %v385_v12, 3  ;;  %vm674_vm12 = vcmp.ge.s32.totalorder %v385_v12, 2 }
 0x1b7   : > { %v454_v34 = vadd.f32 %v452_v10, %v435_v32  ;;  %1285 = vrot.lane.b32.xlu1 %v1276_v28, %s2144_s25  ;;  %v487_v31 = vpop.permute.xlu1 %486  ;;  %1287 = vrot.lane.b32.xlu0 %v1280_v7, %s2144_s25  ;;  %vm830_vm15 = vcmp.ge.s32.totalorder %v385_v12, 1  ;;  %v1717_v27 = vsel %vm531_vm11, 1.0, %v2132_v4  ;;  %v1740_v48 = vsel %vm674_vm12, 1.0, %v2132_v4 }
 0x1b8   : > { %v488_v18 = vrot.slane %v487_v31, 2  ;;  %v1718_v61 = vsel %vm532_vm13, 1.0, %v2132_v4  ;;  %v1741_v3 = vsel %vm675_vm14, 1.0, %v2132_v4  ;;  %vm1264_vm2 = vcmp.lt.s32.totalorder %v385_v12, 14 }
 0x1b9   : > { %v473_v20 = vadd.f32 %v471_v16, %v454_v34  ;;  %v1763_v46 = vsel %vm830_vm15, 1.0, %v2132_v4  ;;  %vm831_vm4 = vcmp.ge.s32.totalorder %v392_v26, 1  ;;  %vm1108_vm5 = vcmp.lt.s32.totalorder %v385_v12, 15 }
 0x1ba   : > { %v490_v39 = vsel %vm489_vm8, %v487_v31, %v488_v18  ;;  %vm1420_vm6 = vcmp.lt.s32.totalorder %v385_v12, 13  ;;  %vm1109_vm8 = vcmp.lt.s32.totalorder %v392_v26, 15  ;;  %vm1447_vm9 = vcmask 998400  }
 0x1bb   : > { %v492_v25 = vadd.f32 %v490_v39, %v473_v20  ;;  %1289 = vrot.lane.b32.xlu1 %v1284_v63, %s2144_s25  ;;  %v525_v44 = vpop.permute.xlu1 %524  ;;  %1441 = vrot.lane.b32.xlu0 %v1432_v21, %s2145_s24  ;;  %v1830_v24 = vsel %vm1264_vm2, 1.0, %v2132_v4  ;;  %v1764_v7 = vsel %vm831_vm4, 1.0, %v2132_v4  ;;  %v1807_v22 = vsel %vm1108_vm5, 1.0, %v2132_v4 }
 0x1bc   : > { %v526_v45 = vrot.slane %v525_v44, 2  ;;  %v1853_v9 = vsel %vm1420_vm6, 1.0, %v2132_v4  ;;  %vm1421_vm11 = vcmp.lt.s32.totalorder %v392_v26, 13  ;;  %v1808_v17 = vsel %vm1109_vm8, 1.0, %v2132_v4 }
 0x1bd   : > { %v511_v49 = vadd.f32 %v509_v8, %v492_v25  ;;  %vm1475_vm12 = vcmask 1022976   ;;  %v1854_v41 = vsel %vm1421_vm11, 1.0, %v2132_v4  ;;  %vm1527_vm13 = vcmp.lt.s32.totalorder %v331_v19, 256 }
 0x1be   : > { %v528_v33 = vsel %vm527_vm10, %v525_v44, %v526_v45  ;;  %vm1265_vm10 = vcmp.lt.s32.totalorder %v392_v26, 14 }
 0x1bf   : > { %v2925_v62 = vadd.f32 %v528_v33, %v511_v49  ;;  %1443 = vrot.lane.b32.xlu1 %v1436_v37, %s2145_s24  ;;  %1445 = vrot.lane.b32.xlu0 %v1440_v51, %s2145_s24  ;;  %v1831_v35 = vsel %vm1265_vm10, 1.0, %v2132_v4 }
 0x1c1   : > { %v549_v36 = vrot.slane %v2925_v62, %v2812_v56  ;;  %v545_v6 = vrot.slane %v2925_v62, %v2821_v2 }
 0x1c3   : > { %1469 = vrot.lane.b32.xlu1 %v1460_v57, %s2146_s28  ;;  %1471 = vrot.lane.b32.xlu0 %v1464_v0, %s2146_s28  ;;  %v552_v20 = vmul.f32 %v1717_v27, %v545_v6  ;;  %v553_v4 = vmul.f32 %v1718_v61, %v549_v36 }
 0x1c7   : > { %1473 = vrot.lane.b32.xlu1 %v1468_v1, %s2146_s28 }
 0x215   : > { %v698_v11 = vpop.permute.xlu0 %697  ;;  %v700_v52 = vpop.permute.xlu1 %699 }
 0x216   : > { %v704_v32 = vsel %vm703_vm0, %v698_v11, %v700_v52 }
 0x217   : > { %v708_v34 = vmul.f32 %v1740_v48, %v704_v32 }
 0x219   : > { %v702_v53 = vpop.permute.xlu0 %701  ;;  %v1454_v40 = vadd.f32 %v708_v34, %v552_v20  ;;  %v1530_v34 = vld [vmem:[%s3037_s26] sm:$0xff] }
 0x21a   : > { %v705_v63 = vsel %vm703_vm0, %v700_v52, %v702_v53 }
 0x21b   : > { %v709_v33 = vmul.f32 %v1741_v3, %v705_v63 }
 0x21d   : > { %v854_v13 = vpop.permute.xlu1 %853  ;;  %v856_v50 = vpop.permute.xlu0 %855 }
 0x21e   : > { %v860_v31 = vsel %vm859_vm1, %v854_v13, %v856_v50 }
 0x21f   : > { %v864_v39 = vmul.f32 %v1763_v46, %v860_v31 }
 0x221   : > { %v858_v58 = vpop.permute.xlu1 %857  ;;  %v1130_v59 = vpop.permute.xlu0 %1129 }
 0x222   : > { %v861_v43 = vsel %vm859_vm1, %v856_v50, %v858_v58 }
 0x223   : > { %v865_v11 = vmul.f32 %v1764_v7, %v861_v43 }
 0x225   : > { %v1132_v23 = vpop.permute.xlu1 %1131  ;;  %v1134_v60 = vpop.permute.xlu0 %1133 }
 0x226   : > { %v1136_v15 = vsel %vm1135_vm7, %v1130_v59, %v1132_v23  ;;  %v1137_v49 = vsel %vm1135_vm7, %v1132_v23, %v1134_v60  ;;  %v1455_v59 = vadd.f32 %v709_v33, %v553_v4 }
 0x227   : > { %v1140_v25 = vmul.f32 %v1807_v22, %v1136_v15  ;;  %v1141_v52 = vmul.f32 %v1808_v17, %v1137_v49  ;;  %v1539_v22 = vsub.s32 1, %v2327_v29 }
 0x229   : > { %v1286_v47 = vpop.permute.xlu1 %1285  ;;  %v1288_v14 = vpop.permute.xlu0 %1287 }
 0x22a   : > { %v1292_v28 = vsel %vm1291_vm3, %v1286_v47, %v1288_v14 }
 0x22b   : > { %v1296_v18 = vmul.f32 %v1830_v24, %v1292_v28 }
 0x22d   : > { %v1290_v5 = vpop.permute.xlu1 %1289  ;;  %v1442_v42 = vpop.permute.xlu0 %1441  ;;  %v1484_v57 = vadd.f32 %v1296_v18, %v1140_v25 }
 0x22e   : > { %v1293_v21 = vsel %vm1291_vm3, %v1288_v14, %v1290_v5 }
 0x22f   : > { %v1297_v0 = vmul.f32 %v1831_v35, %v1293_v21 }
 0x231   : > { %v1444_v10 = vpop.permute.xlu1 %1443  ;;  %v1446_v30 = vpop.permute.xlu0 %1445  ;;  %v1485_v12 = vadd.f32 %v1297_v0, %v1141_v52 }
 0x232   : > { %v1448_v16 = vsel %vm1447_vm9, %v1442_v42, %v1444_v10  ;;  %v1449_v37 = vsel %vm1447_vm9, %v1444_v10, %v1446_v30 }
 0x233   : > { %v1452_v44 = vmul.f32 %v1853_v9, %v1448_v16  ;;  %v1453_v54 = vmul.f32 %v1854_v41, %v1449_v37 }
 0x235   : > { %v1470_v8 = vpop.permute.xlu1 %1469  ;;  %v1472_v45 = vpop.permute.xlu0 %1471  ;;  %v1486_v53 = vadd.f32 %v1484_v57, %v1452_v44  ;;  %v1487_v60 = vadd.f32 %v1485_v12, %v1453_v54 }
 0x236   : > { %v1476_v51 = vsel %vm1475_vm12, %v1470_v8, %v1472_v45 }
 0x237   : > { %v1480_v1 = vadd.f32 %v1476_v51, %v864_v39 }
 0x239   : > { %v1482_v13 = vadd.f32 %v1480_v1, %v1454_v40  ;;  %v1474_v50 = vpop.permute.xlu1 %1473 }
 0x23a   : > { %v1477_v58 = vsel %vm1475_vm12, %v1472_v45, %v1474_v50 }
 0x23b   : > { %v1488_v26 = vadd.f32 %v1486_v53, %v1482_v13  ;;  %v1481_v23 = vadd.f32 %v1477_v58, %v865_v11 }
 0x23d   : > { %v1492_v47 = vadd.f32 %v1491_v55, %v1488_v26  ;;  %v1483_v14 = vadd.f32 %v1481_v23, %v1455_v59 }
 0x23f   : > { %v1494_v27 = vmax.f32 %v1492_v47, 0.0  ;;  %v1489_v48 = vadd.f32 %v1487_v60, %v1483_v14 }
 0x241   : > { %v1855_v56 = vmul.f32 -1.442695, %v1494_v27  ;;  %v1493_v62 = vadd.f32 %v1491_v55, %v1489_v48 }
 0x243   : > { %1959 = vpow2.f32 %v1855_v56  ;;  %v1495_v36 = vmax.f32 %v1493_v62, 0.0 }
 0x245   : > { %v1856_v61 = vmul.f32 -1.442695, %v1495_v36 }
 0x247   : > { %1961 = vpow2.f32 %v1856_v61 }
 0x250   : > { %v1960_v3 = vpop.eup %1959 }
 0x251   : > { %v1502_v5 = vadd.f32 1.0, %v1960_v3 }
 0x253   : > { %1963 = vrcp.f32 %v1502_v5 }
 0x254   : > { %v1962_v42 = vpop.eup %1961 }
 0x255   : > { %v1503_v46 = vadd.f32 1.0, %v1962_v42 }
 0x257   : > { %1965 = vrcp.f32 %v1503_v46 }
 0x260   : > { %v1964_v32 = vpop.eup %1963 }
 0x264   : > { %v1966_v6 = vpop.eup %1965 }
 0x265   : > { %v1510_v24 = vcombine.low %v1964_v32, %v1966_v6 }
 0x267   : > { %v1517_v28 = vrot.slane %v1510_v24, %v2330_v38 }
 0x269   : > { %v1524_v7 = vrot.slane %v1517_v28, %v2330_v38 }
 0x26b   : > { %1529 = vst.msk [vmem:[#allocation2] sm:$0x3] %vm1527_vm13, %v1524_v7 }
 0x272   : > { %v1531_v9 = vld [vmem:[#allocation2] sm:$0x3] }
 0x273   : > { %v1536_v10 = vrot.slane %v1531_v9, %v2821_v2  ;;  %v1540_v30 = vrot.slane %v1531_v9, %v1539_v22 }
 0x275   : > { %v1541_v31 = vcombine.low %v1536_v10, %v1540_v30 }
 0x277   : > { %v1543_v15 = vmul.f32 %v1541_v31, %v1530_v34 }
 0x279   : > { %1544 = vst [vmem:[%s284_s10] sm:$0xff] %v1543_v15 }
 0x27a   : > { %2052 = shalt.err (!%p2049_p13)
}
 0x27b   : > { %s2053_s0 = scalar_lea.hbm %s1560_s16, 128  ;;  %s2057_s25 = scalar_lea.hbm %s3018_s4, 256 }
 0x27c   : > { %p2054_p12 = scmp.ne.s32.totalorder %s1560_s16, %s2053_s0  ;;  %p2058_p7 = scmp.lt.s32.totalorder %s1560_s16, %s3018_s4 }
 0x27d   : > { %p2059_p10 = scmp.lt.s32.totalorder %s2057_s25, %s2053_s0 }
 0x27e   : > { %p2055_p3 = pnand %p2054_p12, %p2262_p0 }
 0x27f   : > { %p2060_p11 = por %p2059_p10, %p2058_p7 }
 0x280   : > { %p2056_p5 = pneg %p2055_p3 }
 0x282   : > { %p2061_p1 = pnand %p2060_p11, %p2056_p5 }
 0x284   : > { %2064 = shalt.err (!%p2061_p1)
}
 0x285   : > { %1873 = dma.vmem_to_hbm [thread:$0]  (%p2262_p0), %s1563_s30, 128, %s1560_s16, %s1546_s9  }
 0x286 PF: > { %s1574_s11 = sand.u32 1, %s2107_s17   ;;  %p3038_p8 = scmp.ne.s32.totalorder %s3025_s27, 0 }
 0x287   : > { %p3039_p2 = scmp.ge.s32.totalorder %s2127_s22, 2  ;;  %s1575_s26 = scalar_lea.sflag [#allocation7], %s1574_s11 }
 0x289   : > { %p1887_p6 = pnand %p3039_p2, %p3038_p8 }
 0x28b   : > { %p1888_p4 = pneg %p1887_p6 }
 0x28d   : > { %2102 = dma.done.wait (%p1888_p4), %s1575_s26, 128  }
 0x28e   : > { %2104 = vsyncadd (%p1888_p4), %s1575_s26, 4294967168  ;;  %s25_s22 = sadd.s32 1, %s2127_s22   ;;  %s3040_s17 = smov %s2111_s18 }
 0x28f   : > { %p22_p9 = scmp.ge.s32.totalorder %s25_s22, 4   ;;  %s3041_s18 = smov %s2115_s19 }
 0x290   : > { %s3042_s19 = smov %s2270_s14  ;;  %s3043_s20 = smov %s2123_s21 }
 0x291   : > { %s3044_s21 = smov %s3046_s7  ;;  %24 = sbr.rel (!%p22_p9) target bundleno = 12 (0xc), region = 104 }
 0x296   :  { %1580 = vsyncpa [#allocation6], 1 }
 0x297   :  { %1582 = vsyncpa [#allocation6 + $0x1], 1 }
 0x298   :  { %1583 = vsyncpa [#allocation11], 1 }
 0x299   :  { %1585 = vsyncpa [#allocation11 + $0x1], 1 }
 0x29a   :  { %1586 = vsyncpa [#allocation7], 1 }
 0x29b   :  { %1588 = vsyncpa [#allocation7 + $0x1], 1 }
 0x29c   :  { %1589 = vsyncpa [#allocation8], 1 }
 0x29d   :  { %1591 = vsyncpa [#allocation8 + $0x1], 1 }

</bundles_post_ra>
